<compile_context>
chip_gen: v7x
topology: tpu7x:2x2x1
jax: 0.10.0
libtpu: 0.0.40
codegen_flags: <defaults>
</compile_context>

<pallas_src>
import jax
import jax.numpy as jnp
from jax.experimental import pallas as pl
from jax.experimental.pallas import tpu as pltpu

# ---------------- configuration (small synthetic shapes) ----------------
B = 2              # batch
C_IN = 3           # image channels
C_MID = 32         # stand-in backbone width      (real MGN: 1024)
C_P = 128          # branch feature channels      (real MGN: 2048)
FEATS = 64         # args.feats                   (real MGN: 256)
RED = 16           # ChannelAttn reduction_rate
HID = FEATS // RED
HID_PAD = 8        # HID padded to a clean sublane multiple (zero-padded)
NUM_CLASSES = 16   # args.num_classes
H_IN, W_IN = 24, 8 # spatial size of p2/p3 branch feature maps (p1 is /2)
EPS = 1e-5         # BatchNorm eps
S1 = (H_IN // 2) * (W_IN // 2)   # 48  spatial positions of p1
S2 = H_IN * W_IN                 # 192 spatial positions of p2/p3
S2_HALF = S2 // 2                # 96  (MaxPool2d(12,8) strip)
S2_THIRD = S2 // 3               # 64  (MaxPool2d(8,8) strip)


# --------------------------- fused MGN head kernel ---------------------------
def _mgn_fused_kernel(x1_ref, x2_ref, x3_ref, wr_ref, w1_ref, b1_ref,
                      w2_ref, b2_ref, wfc_ref, bfc_ref, f_ref, l_ref):
    # x1: (B, 48, C_P)  bf16 p1 feature map, channels-last
    # x2: (B, 192, C_P) bf16 p2 feature map
    # x3: (B, 192, C_P) bf16 p3 feature map
    # wr : (8*C_P, 8*FEATS)    bf16 block-diagonal, BN gamma folded
    # w1 : (8*FEATS, 8*HID_PAD) bf16 block-diag (shared W1 replicated)
    # b1 : (1, 8*HID_PAD)  f32     w2: (8*HID_PAD, 8*FEATS) bf16    b2: (1, 8*FEATS) f32
    # wfc: (8*FEATS, 8*NUM_CLASSES) bf16 block-diagonal   bfc: (1, 8*NUM_CLASSES) f32
    # f_ref: (B, 8*FEATS) f32     l_ref: (B, 8*NUM_CLASSES) f32

    # --- strip max-pools: sublane reductions, lane-dense (B, C_P) results ---
    zg_p1 = jnp.max(x1_ref[:, 0:S1, :], axis=1)                    # MaxPool2d(12,4)

    z0_p2 = jnp.max(x2_ref[:, 0:S2_HALF, :], axis=1)               # MaxPool2d(12,8) strip 0
    z1_p2 = jnp.max(x2_ref[:, S2_HALF:S2, :], axis=1)              # strip 1
    zg_p2 = jnp.maximum(z0_p2, z1_p2)                              # MaxPool2d(24,8) from partials

    z0_p3 = jnp.max(x3_ref[:, 0:S2_THIRD, :], axis=1)              # MaxPool2d(8,8) strip 0
    z1_p3 = jnp.max(x3_ref[:, S2_THIRD:2 * S2_THIRD, :], axis=1)   # strip 1
    z2_p3 = jnp.max(x3_ref[:, 2 * S2_THIRD:S2, :], axis=1)         # strip 2
    zg_p3 = jnp.maximum(jnp.maximum(z0_p3, z1_p3), z2_p3)          # MaxPool2d(24,8) from partials

    # (B, 8*C_P) lane slab in [fg_p1, fg_p2, fg_p3, f0_p2, f1_p2, f0_p3, f1_p3, f2_p3] order
    z_slab = jnp.concatenate(
        [zg_p1, zg_p2, zg_p3, z0_p2, z1_p2, z0_p3, z1_p3, z2_p3],
        axis=-1).astype(wr_ref.dtype)                              # (B, 1024) bf16

    # --- reduction_0..7: Conv2d(C_P->FEATS,1,bias=False)+BN+ReLU, one block-diag matmul ---
    y = jnp.dot(z_slab, wr_ref[...], preferred_element_type=jnp.float32)
    y = jnp.maximum(y, 0.0)                                        # (B, 8*FEATS) f32

    # --- shared ChannelAttn on the whole slab (replicated block-diag weights) ---
    a = jnp.dot(y.astype(w1_ref.dtype), w1_ref[...],
                preferred_element_type=jnp.float32) + b1_ref[...]
    a = jnp.maximum(a, 0.0)                                        # (B, 8*HID_PAD)
    a = jnp.dot(a.astype(w2_ref.dtype), w2_ref[...],
                preferred_element_type=jnp.float32) + b2_ref[...]
    a = jnp.maximum(a, 0.0)                                        # (B, 8*FEATS)
    f = a * y                                                      # gating multiply

    f_ref[...] = f.astype(f_ref.dtype)                             # one unmasked 512-lane store

    # --- fc_id_*: Linear(FEATS -> NUM_CLASSES) x8, one block-diag matmul ---
    logits = jnp.dot(f.astype(wfc_ref.dtype), wfc_ref[...],
                     preferred_element_type=jnp.float32) + bfc_ref[...]
    l_ref[...] = logits.astype(l_ref.dtype)                        # one unmasked 128-lane store


def mgn_head_fused(x1, x2, x3, p):
    """Single-invocation fused head: pooling + reduction + ChannelAttn + fc.

    No grid; every operand is a full-array VMEM block (total < 2 MiB)."""
    vmem = lambda: pl.BlockSpec(memory_space=pltpu.MemorySpace.VMEM)
    return pl.pallas_call(
        _mgn_fused_kernel,
        out_shape=(jax.ShapeDtypeStruct((B, 8 * FEATS), jnp.float32),
                   jax.ShapeDtypeStruct((B, 8 * NUM_CLASSES), jnp.float32)),
        in_specs=[vmem() for _ in range(10)],
        out_specs=(vmem(), vmem()),
    )(x1, x2, x3, p['Wr'], p['W1'], p['b1'], p['W2'], p['b2'],
      p['Wfc'], p['bfc'])


# -------------------- parameters (deterministic init) --------------------
def _block_diag(blocks):
    """Assemble a block-diagonal matrix from a list of (K_i, N_i) blocks."""
    K = sum(b.shape[0] for b in blocks)
    N = sum(b.shape[1] for b in blocks)
    out = jnp.zeros((K, N), blocks[0].dtype)
    ko = no = 0
    for b in blocks:
        out = out.at[ko:ko + b.shape[0], no:no + b.shape[1]].set(b)
        ko += b.shape[0]
        no += b.shape[1]
    return out


def init_params(key):
    ks = jax.random.split(key, 12)
    inv_bn = 1.0 / float(jnp.sqrt(jnp.float32(1.0 + EPS)))  # eval-mode BN scale
    p = {}
    # stand-in backbone weights
    p['w_stem'] = 0.1 * jax.random.normal(ks[0], (C_MID, C_IN), jnp.float32)
    p['w_p1'] = 0.1 * jax.random.normal(ks[1], (C_P, C_MID), jnp.float32)
    p['w_p2'] = 0.1 * jax.random.normal(ks[2], (C_P, C_MID), jnp.float32)
    p['w_p3'] = 0.1 * jax.random.normal(ks[3], (C_P, C_MID), jnp.float32)

    # 8 reduction blocks: kaiming_normal(fan_in) conv weight, BN gamma~N(1,0.02), beta=0.
    # Pre-transposed to (C_P, FEATS), BN scale folded, assembled block-diagonally.
    std_r = (2.0 / C_P) ** 0.5
    Wr = std_r * jax.random.normal(ks[4], (8, FEATS, C_P), jnp.float32)
    gr = 1.0 + 0.02 * jax.random.normal(ks[5], (8, FEATS), jnp.float32)
    Wr_t = jnp.transpose(Wr, (0, 2, 1)) * (gr * inv_bn)[:, None, :]   # (8, C_P, FEATS)
    p['Wr'] = _block_diag([Wr_t[i] for i in range(8)]).astype(jnp.bfloat16)  # (1024, 512)

    # shared ChannelAttn (ConvBlock = 1x1 conv(bias) + BN + ReLU; BN gamma=1, beta=0).
    # HID zero-padded 4 -> 8, inv_bn folded, replicated block-diagonally (shared weights).
    W1 = 0.2 * jax.random.normal(ks[6], (HID, FEATS), jnp.float32)
    b1 = 0.01 * jax.random.normal(ks[7], (HID,), jnp.float32)
    W2 = 0.2 * jax.random.normal(ks[8], (FEATS, HID), jnp.float32)
    b2 = 0.01 * jax.random.normal(ks[9], (FEATS,), jnp.float32)
    W1_t = jnp.zeros((FEATS, HID_PAD), jnp.float32).at[:, :HID].set(W1.T * inv_bn)
    b1_p = jnp.zeros((1, HID_PAD), jnp.float32).at[:, :HID].set(b1[None, :] * inv_bn)
    W2_t = jnp.zeros((HID_PAD, FEATS), jnp.float32).at[:HID, :].set(W2.T * inv_bn)
    p['W1'] = _block_diag([W1_t] * 8).astype(jnp.bfloat16)            # (512, 64)
    p['b1'] = jnp.tile(b1_p, (1, 8))                                  # (1, 64)
    p['W2'] = _block_diag([W2_t] * 8).astype(jnp.bfloat16)            # (64, 512)
    p['b2'] = jnp.tile((b2 * inv_bn)[None, :], (1, 8))                # (1, 512)

    # 8 fc heads: kaiming_normal(fan_out) weight, bias=0; block-diagonal (512, 128).
    std_fc = (2.0 / NUM_CLASSES) ** 0.5
    Wfc = std_fc * jax.random.normal(ks[10], (8, NUM_CLASSES, FEATS), jnp.float32)
    Wfc_t = jnp.transpose(Wfc, (0, 2, 1))                             # (8, FEATS, NC)
    p['Wfc'] = _block_diag([Wfc_t[i] for i in range(8)]).astype(jnp.bfloat16)
    p['bfc'] = jnp.zeros((1, 8 * NUM_CLASSES), jnp.float32)
    return p


# ---------------------- stand-in backbone (plain JAX) --------------------
def backbone_standin(x, p):
    # TODO(synk): resnet50 stem/layer1-3, Nonlocal and Bottleneck branch bodies
    # are not defined in the reference source; replaced with deterministic
    # 1x1-conv stand-ins producing MGN branch shapes (p1: H/2 x W/2, p2/p3: H x W),
    # emitted channels-last / spatial-flattened / bf16 so the kernel gets
    # lane-dense blocks with half the HBM->VMEM DMA bytes.
    xl = jnp.transpose(x, (0, 2, 3, 1))                                  # (B, H, W, C_IN)
    h = jax.nn.relu(jnp.einsum('bhwc,oc->bhwo', xl, p['w_stem']))        # (B, 24, 8, C_MID)
    h1 = h.reshape(B, H_IN // 2, 2, W_IN // 2, 2, C_MID).mean(axis=(2, 4))
    p1 = jax.nn.relu(jnp.einsum('bhwc,oc->bhwo', h1, p['w_p1']))         # (B, 12, 4, C_P)
    p2 = jax.nn.relu(jnp.einsum('bhwc,oc->bhwo', h, p['w_p2']))          # (B, 24, 8, C_P)
    p3 = jax.nn.relu(jnp.einsum('bhwc,oc->bhwo', h, p['w_p3']))          # (B, 24, 8, C_P)
    return (p1.reshape(B, S1, C_P).astype(jnp.bfloat16),
            p2.reshape(B, S2, C_P).astype(jnp.bfloat16),
            p3.reshape(B, S2, C_P).astype(jnp.bfloat16))


# ------------------------------ MGN forward ------------------------------
def mgn_forward(x, p):
    x1, x2, x3 = backbone_standin(x, p)

    # fused pooling + reduction + ChannelAttn + classifiers (one kernel launch)
    F_out, L_out = mgn_head_fused(x1, x2, x3, p)

    # F_out columns are already ordered [fg_p1, fg_p2, fg_p3, f0_p2, f1_p2,
    # f0_p3, f1_p3, f2_p3]  ->  `predict` is the slab itself (no transpose).
    predict = F_out
    fg_p1 = F_out[:, 0 * FEATS:1 * FEATS]
    fg_p2 = F_out[:, 1 * FEATS:2 * FEATS]
    fg_p3 = F_out[:, 2 * FEATS:3 * FEATS]

    NC = NUM_CLASSES
    l_p1 = L_out[:, 0 * NC:1 * NC]
    l_p2 = L_out[:, 1 * NC:2 * NC]
    l_p3 = L_out[:, 2 * NC:3 * NC]
    l0_p2 = L_out[:, 3 * NC:4 * NC]
    l1_p2 = L_out[:, 4 * NC:5 * NC]
    l0_p3 = L_out[:, 5 * NC:6 * NC]
    l1_p3 = L_out[:, 6 * NC:7 * NC]
    l2_p3 = L_out[:, 7 * NC:8 * NC]

    return (predict, fg_p1, fg_p2, fg_p3, l_p1, l_p2, l_p3,
            l0_p2, l1_p2, l0_p3, l1_p3, l2_p3)


if __name__ == "__main__":
    key = jax.random.PRNGKey(0)
    k_x, k_p = jax.random.split(key)
    x = jax.random.normal(k_x, (B, C_IN, H_IN, W_IN), jnp.float32)
    params = init_params(k_p)

    outs = jax.jit(mgn_forward)(x, params)
    outs = jax.block_until_ready(outs)

    assert outs[0].shape == (B, 8 * FEATS)            # predict
    assert outs[1].shape == (B, FEATS)                # fg_p1
    assert outs[4].shape == (B, NUM_CLASSES)          # l_p1
    assert len(outs) == 12
    print("KERNEL_OK")
</pallas_src>

<mosaic_0001>
module attributes {stable_mosaic.version = 11 : i64} {
  func.func @_mgn_fused_kernel(%arg0: memref<2x48x128xbf16, #tpu.memory_space<vmem>>, %arg1: memref<2x192x128xbf16, #tpu.memory_space<vmem>>, %arg2: memref<2x192x128xbf16, #tpu.memory_space<vmem>>, %arg3: memref<1024x512xbf16, #tpu.memory_space<vmem>>, %arg4: memref<512x64xbf16, #tpu.memory_space<vmem>>, %arg5: memref<1x64xf32, #tpu.memory_space<vmem>>, %arg6: memref<64x512xbf16, #tpu.memory_space<vmem>>, %arg7: memref<1x512xf32, #tpu.memory_space<vmem>>, %arg8: memref<512x128xbf16, #tpu.memory_space<vmem>>, %arg9: memref<1x128xf32, #tpu.memory_space<vmem>>, %arg10: memref<2x512xf32, #tpu.memory_space<vmem>>, %arg11: memref<2x128xf32, #tpu.memory_space<vmem>>) attributes {dimension_semantics = [], scalar_prefetch = 0 : i64, scratch_operands = 0 : i64, tpu.core_type = #tpu.core_type<tc>} {
    %c0 = arith.constant 0 : index
    %c0_0 = arith.constant 0 : index
    %c0_1 = arith.constant 0 : index
    %0 = vector.load %arg0[%c0, %c0_0, %c0_1] : memref<2x48x128xbf16, #tpu.memory_space<vmem>>, vector<2x48x128xbf16>
    %cst = arith.constant dense<0xFF80> : vector<2x128xbf16>
    %1 = vector.multi_reduction <maximumf>, %0, %cst [1] : vector<2x48x128xbf16> to vector<2x128xbf16>
    %c0_2 = arith.constant 0 : index
    %c0_3 = arith.constant 0 : index
    %c0_4 = arith.constant 0 : index
    %2 = vector.load %arg1[%c0_2, %c0_3, %c0_4] : memref<2x192x128xbf16, #tpu.memory_space<vmem>>, vector<2x96x128xbf16>
    %cst_5 = arith.constant dense<0xFF80> : vector<2x128xbf16>
    %3 = vector.multi_reduction <maximumf>, %2, %cst_5 [1] : vector<2x96x128xbf16> to vector<2x128xbf16>
    %c0_6 = arith.constant 0 : index
    %c96 = arith.constant 96 : index
    %c0_7 = arith.constant 0 : index
    %4 = vector.load %arg1[%c0_6, %c96, %c0_7] : memref<2x192x128xbf16, #tpu.memory_space<vmem>>, vector<2x96x128xbf16>
    %cst_8 = arith.constant dense<0xFF80> : vector<2x128xbf16>
    %5 = vector.multi_reduction <maximumf>, %4, %cst_8 [1] : vector<2x96x128xbf16> to vector<2x128xbf16>
    %6 = arith.maximumf %3, %5 : vector<2x128xbf16>
    %c0_9 = arith.constant 0 : index
    %c0_10 = arith.constant 0 : index
    %c0_11 = arith.constant 0 : index
    %7 = vector.load %arg2[%c0_9, %c0_10, %c0_11] : memref<2x192x128xbf16, #tpu.memory_space<vmem>>, vector<2x64x128xbf16>
    %cst_12 = arith.constant dense<0xFF80> : vector<2x128xbf16>
    %8 = vector.multi_reduction <maximumf>, %7, %cst_12 [1] : vector<2x64x128xbf16> to vector<2x128xbf16>
    %c0_13 = arith.constant 0 : index
    %c64 = arith.constant 64 : index
    %c0_14 = arith.constant 0 : index
    %9 = vector.load %arg2[%c0_13, %c64, %c0_14] : memref<2x192x128xbf16, #tpu.memory_space<vmem>>, vector<2x64x128xbf16>
    %cst_15 = arith.constant dense<0xFF80> : vector<2x128xbf16>
    %10 = vector.multi_reduction <maximumf>, %9, %cst_15 [1] : vector<2x64x128xbf16> to vector<2x128xbf16>
    %c0_16 = arith.constant 0 : index
    %c128 = arith.constant 128 : index
    %c0_17 = arith.constant 0 : index
    %11 = vector.load %arg2[%c0_16, %c128, %c0_17] : memref<2x192x128xbf16, #tpu.memory_space<vmem>>, vector<2x64x128xbf16>
    %cst_18 = arith.constant dense<0xFF80> : vector<2x128xbf16>
    %12 = vector.multi_reduction <maximumf>, %11, %cst_18 [1] : vector<2x64x128xbf16> to vector<2x128xbf16>
    %13 = arith.maximumf %8, %10 : vector<2x128xbf16>
    %14 = arith.maximumf %13, %12 : vector<2x128xbf16>
    %15 = tpu.concatenate %1, %6, %14, %3, %5, %8, %10, %12 in 1 : vector<2x128xbf16>, vector<2x128xbf16>, vector<2x128xbf16>, vector<2x128xbf16>, vector<2x128xbf16>, vector<2x128xbf16>, vector<2x128xbf16>, vector<2x128xbf16> -> vector<2x1024xbf16>
    %c0_19 = arith.constant 0 : index
    %c0_20 = arith.constant 0 : index
    %16 = vector.load %arg3[%c0_19, %c0_20] : memref<1024x512xbf16, #tpu.memory_space<vmem>>, vector<1024x512xbf16>
    %cst_21 = arith.constant dense<0.000000e+00> : vector<2x512xf32>
    %17 = tpu.matmul %15, %16, %cst_21 {dimension_numbers = #tpu.dot_dimension_numbers<[1], [0], [0], [1], [0, 0, 1, 1], [], []>} : vector<2x1024xbf16>, vector<1024x512xbf16>, vector<2x512xf32> -> vector<2x512xf32>
    %cst_22 = arith.constant 0.000000e+00 : f32
    %18 = vector.broadcast %cst_22 : f32 to vector<2x512xf32>
    %19 = arith.maximumf %17, %18 : vector<2x512xf32>
    %20 = arith.truncf %19 : vector<2x512xf32> to vector<2x512xbf16>
    %c0_23 = arith.constant 0 : index
    %c0_24 = arith.constant 0 : index
    %21 = vector.load %arg4[%c0_23, %c0_24] : memref<512x64xbf16, #tpu.memory_space<vmem>>, vector<512x64xbf16>
    %cst_25 = arith.constant dense<0.000000e+00> : vector<2x64xf32>
    %22 = tpu.matmul %20, %21, %cst_25 {dimension_numbers = #tpu.dot_dimension_numbers<[1], [0], [0], [1], [0, 0, 1, 1], [], []>} : vector<2x512xbf16>, vector<512x64xbf16>, vector<2x64xf32> -> vector<2x64xf32>
    %c0_26 = arith.constant 0 : index
    %c0_27 = arith.constant 0 : index
    %23 = vector.load %arg5[%c0_26, %c0_27] : memref<1x64xf32, #tpu.memory_space<vmem>>, vector<1x64xf32>
    %24 = vector.broadcast %23 : vector<1x64xf32> to vector<2x64xf32>
    %25 = arith.addf %22, %24 : vector<2x64xf32>
    %cst_28 = arith.constant 0.000000e+00 : f32
    %26 = vector.broadcast %cst_28 : f32 to vector<2x64xf32>
    %27 = arith.maximumf %25, %26 : vector<2x64xf32>
    %28 = arith.truncf %27 : vector<2x64xf32> to vector<2x64xbf16>
    %c0_29 = arith.constant 0 : index
    %c0_30 = arith.constant 0 : index
    %29 = vector.load %arg6[%c0_29, %c0_30] : memref<64x512xbf16, #tpu.memory_space<vmem>>, vector<64x512xbf16>
    %cst_31 = arith.constant dense<0.000000e+00> : vector<2x512xf32>
    %30 = tpu.matmul %28, %29, %cst_31 {dimension_numbers = #tpu.dot_dimension_numbers<[1], [0], [0], [1], [0, 0, 1, 1], [], []>} : vector<2x64xbf16>, vector<64x512xbf16>, vector<2x512xf32> -> vector<2x512xf32>
    %c0_32 = arith.constant 0 : index
    %c0_33 = arith.constant 0 : index
    %31 = vector.load %arg7[%c0_32, %c0_33] : memref<1x512xf32, #tpu.memory_space<vmem>>, vector<1x512xf32>
    %32 = vector.broadcast %31 : vector<1x512xf32> to vector<2x512xf32>
    %33 = arith.addf %30, %32 : vector<2x512xf32>
    %cst_34 = arith.constant 0.000000e+00 : f32
    %34 = vector.broadcast %cst_34 : f32 to vector<2x512xf32>
    %35 = arith.maximumf %33, %34 : vector<2x512xf32>
    %36 = arith.mulf %35, %19 : vector<2x512xf32>
    %c0_35 = arith.constant 0 : index
    %c0_36 = arith.constant 0 : index
    %37 = vector.load %arg10[%c0_35, %c0_36] : memref<2x512xf32, #tpu.memory_space<vmem>>, vector<2x512xf32>
    tpu.vector_store %arg10[%c0_35, %c0_36], %36 {strides = array<i32>} : memref<2x512xf32, #tpu.memory_space<vmem>>, vector<2x512xf32>,
    %38 = arith.truncf %36 : vector<2x512xf32> to vector<2x512xbf16>
    %c0_37 = arith.constant 0 : index
    %c0_38 = arith.constant 0 : index
    %39 = vector.load %arg8[%c0_37, %c0_38] : memref<512x128xbf16, #tpu.memory_space<vmem>>, vector<512x128xbf16>
    %cst_39 = arith.constant dense<0.000000e+00> : vector<2x128xf32>
    %40 = tpu.matmul %38, %39, %cst_39 {dimension_numbers = #tpu.dot_dimension_numbers<[1], [0], [0], [1], [0, 0, 1, 1], [], []>} : vector<2x512xbf16>, vector<512x128xbf16>, vector<2x128xf32> -> vector<2x128xf32>
    %c0_40 = arith.constant 0 : index
    %c0_41 = arith.constant 0 : index
    %41 = vector.load %arg9[%c0_40, %c0_41] : memref<1x128xf32, #tpu.memory_space<vmem>>, vector<1x128xf32>
    %42 = vector.broadcast %41 : vector<1x128xf32> to vector<2x128xf32>
    %43 = arith.addf %40, %42 : vector<2x128xf32>
    %c0_42 = arith.constant 0 : index
    %c0_43 = arith.constant 0 : index
    %44 = vector.load %arg11[%c0_42, %c0_43] : memref<2x128xf32, #tpu.memory_space<vmem>>, vector<2x128xf32>
    tpu.vector_store %arg11[%c0_42, %c0_43], %43 {strides = array<i32>} : memref<2x128xf32, #tpu.memory_space<vmem>>, vector<2x128xf32>,
    return
  }
}

</mosaic_0001>

<bundles_post_ra>
// kernel: mgn_forward.1
= control target key start
LH: loop header
LB: loop body
LE: loop exit
PB: predicated region body
PF: predicated region fallthrough
CT: control target
= control target key end

     0   :  { %17 = vsyncpa [#allocation3], 0  ;;  %s4579_s17 = smov [#allocation2]   ;;  %s5833_s0 = inlined_call_operand.vmem [shape: bf16[2,48,128], index: 0, kind: input, shape index: {}]   ;;  %s5834_s1 = inlined_call_operand.vmem [shape: bf16[2,192,128], index: 1, kind: input, shape index: {}]   ;;  %s5835_s2 = inlined_call_operand.vmem [shape: bf16[2,192,128], index: 2, kind: input, shape index: {}]   ;;  %s5836_s3 = inlined_call_operand.vmem [shape: bf16[1024,512], index: 3, kind: input, shape index: {}]   ;;  %s5837_s4 = inlined_call_operand.vmem [shape: bf16[512,64], index: 4, kind: input, shape index: {}]   ;;  %s5838_s5 = inlined_call_operand.vmem [shape: f32[1,64], index: 5, kind: input, shape index: {}]   ;;  %s5839_s6 = inlined_call_operand.hbm [shape: bf16[64,512], index: 6, kind: input, shape index: {}]   ;;  %s5840_s7 = inlined_call_operand.vmem [shape: f32[1,512], index: 7, kind: input, shape index: {}]   ;;  %s5841_s8 = inlined_call_operand.vmem [shape: bf16[512,128], index: 8, kind: input, shape index: {}]   ;;  %s5842_s9 = inlined_call_operand.vmem [shape: f32[1,128], index: 9, kind: input, shape index: {}]   ;;  %s5843_s10 = inlined_call_operand.vmem [shape: f32[2,512], index: 10, kind: output, shape index: {0}]   ;;  %s5844_s11 = inlined_call_operand.vmem [shape: f32[2,128], index: 11, kind: output, shape index: {1}]  }
   0x1   :  { %s35_s18 = sshll.u32 %s4579_s17, 4  ;;  %s4555_s21 = scalar_lea.hbm %s5839_s6, 2048  ;;  %s36_s18 = int_to_ptr.vmem [resolvable:$true] %s35_s18 }
   0x2   :  { %p4556_p0 = scmp.ne.s32.totalorder %s5839_s6, %s4555_s21  ;;  %p4559_p1 = scmp.lt.u32.totalorder %s4555_s21, %s5839_s6 }
   0x4   :  { %p4561_p2 = pnand %p4559_p1, %p4556_p0 }
   0x6   :  { %4564 = shalt.err (!%p4561_p2)
}
   0x7   :  { %s4565_s26 = scalar_lea.vmem %s36_s18, 2048  ;;  %p4570_p4 = scmp.lt.s32.totalorder %s36_s18, %s36_s18 }
   0x8   :  { %p4566_p3 = scmp.ne.s32.totalorder %s36_s18, %s4565_s26  ;;  %p4571_p5 = scmp.lt.s32.totalorder %s4565_s26, %s4565_s26 }
   0xa   :  { %p4572_p6 = por %p4571_p5, %p4570_p4 }
   0xc   :  { %p4573_p7 = pnand %p4572_p6, %p4566_p3 }
   0xe   :  { %4576 = shalt.err (!%p4573_p7)
}
   0xf   :  { %s4580_s27 = smov 256   ;;  %s4581_s28 = smov 16  }
  0x10   :  { %41 = dma.hbm_to_vmem [thread:$0]  %s5839_s6, 2048, %s36_s18, [#allocation3], %s4580_s27, %s4580_s27, %s4581_s28  }
  0x11   :  { %4577 = dma.done.wait [#allocation3], 2048  }
  0x12   :  { %4578 = vsyncadd [#allocation3], 4294965248  ;;  %v4029_v0 = vld [vmem:[%s5836_s3 + $0x4] ss:$16 sps:$4 sm:$0xff]   ;;  %v4031_v1 = vld [vmem:[%s5836_s3 + $0xc] ss:$16 sps:$4 sm:$0xff]  }
  0x13   :  { %2245 = vmatprep.subr.bf16.mxu0 %v4029_v0  ;;  %v4033_v2 = vld [vmem:[%s5836_s3] ss:$16 sps:$4 sm:$0xff]   ;;  %v4034_v3 = vld [vmem:[%s5836_s3 + $0x8] ss:$16 sps:$4 sm:$0xff]   ;;  %2409 = vmatprep.subr.bf16.mxu1 %v4031_v1  ;;  %v4035_v4 = vld [vmem:[%s5836_s3 + $0x24] ss:$16 sps:$4 sm:$0xff]  }
  0x14   :  { %2246 = vmatpush1.bf16.msra.mxu0 %v4033_v2  ;;  %2410 = vmatpush1.bf16.msra.mxu1 %v4034_v3  ;;  %v4037_v5 = vld [vmem:[%s5836_s3 + $0x2c] ss:$16 sps:$4 sm:$0xff]   ;;  %v4039_v6 = vld [vmem:[%s5836_s3 + $0x20] ss:$16 sps:$4 sm:$0xff]   ;;  %v4040_v7 = vld [vmem:[%s5836_s3 + $0x28] ss:$16 sps:$4 sm:$0xff]  }
  0x15   :  { %2247 = vmatprep.subr.bf16.mxu0 %v4035_v4  ;;  %2411 = vmatprep.subr.bf16.mxu1 %v4037_v5  ;;  %v4041_v8 = vld [vmem:[%s5836_s3 + $0x44] ss:$16 sps:$4 sm:$0xff]   ;;  %v4043_v9 = vld [vmem:[%s5836_s3 + $0x4c] ss:$16 sps:$4 sm:$0xff]   ;;  %v4045_v10 = vld [vmem:[%s5836_s3 + $0x40] ss:$16 sps:$4 sm:$0xff]  }
  0x16   :  { %v4046_v11 = vld [vmem:[%s5836_s3 + $0x48] ss:$16 sps:$4 sm:$0xff]   ;;  %v4047_v12 = vld [vmem:[%s5836_s3 + $0x64] ss:$16 sps:$4 sm:$0xff]   ;;  %v4049_v13 = vld [vmem:[%s5836_s3 + $0x6c] ss:$16 sps:$4 sm:$0xff]  }
  0x17   :  { %v4051_v14 = vld [vmem:[%s5836_s3 + $0x60] ss:$16 sps:$4 sm:$0xff]   ;;  %v4052_v15 = vld [vmem:[%s5836_s3 + $0x68] ss:$16 sps:$4 sm:$0xff]   ;;  %v4053_v16 = vld [vmem:[%s5836_s3 + $0x84] ss:$16 sps:$4 sm:$0xff]  }
  0x18   :  { %2248 = vmatpush1.bf16.msra.mxu0 %v4039_v6  ;;  %2412 = vmatpush1.bf16.msra.mxu1 %v4040_v7  ;;  %v4055_v17 = vld [vmem:[%s5836_s3 + $0x8c] ss:$16 sps:$4 sm:$0xff]   ;;  %v4057_v18 = vld [vmem:[%s5836_s3 + $0x80] ss:$16 sps:$4 sm:$0xff]   ;;  %v4058_v19 = vld [vmem:[%s5836_s3 + $0x88] ss:$16 sps:$4 sm:$0xff]  }
  0x19   :  { %2249 = vmatprep.subr.bf16.mxu0 %v4041_v8  ;;  %2413 = vmatprep.subr.bf16.mxu1 %v4043_v9  ;;  %v4059_v20 = vld [vmem:[%s5836_s3 + $0xa4] ss:$16 sps:$4 sm:$0xff]   ;;  %v4061_v21 = vld [vmem:[%s5836_s3 + $0xac] ss:$16 sps:$4 sm:$0xff]   ;;  %v4063_v22 = vld [vmem:[%s5836_s3 + $0xa0] ss:$16 sps:$4 sm:$0xff]  }
  0x1a   :  { %v4064_v23 = vld [vmem:[%s5836_s3 + $0xa8] ss:$16 sps:$4 sm:$0xff]   ;;  %v4065_v24 = vld [vmem:[%s5836_s3 + $0xc4] ss:$16 sps:$4 sm:$0xff]   ;;  %v4067_v25 = vld [vmem:[%s5836_s3 + $0xcc] ss:$16 sps:$4 sm:$0xff]  }
  0x1b   :  { %v4069_v26 = vld [vmem:[%s5836_s3 + $0xc0] ss:$16 sps:$4 sm:$0xff]   ;;  %v4070_v27 = vld [vmem:[%s5836_s3 + $0xc8] ss:$16 sps:$4 sm:$0xff]   ;;  %v4071_v28 = vld [vmem:[%s5836_s3 + $0xe4] ss:$16 sps:$4 sm:$0xff]  }
  0x1c   :  { %2250 = vmatpush1.bf16.msra.mxu0 %v4045_v10  ;;  %2414 = vmatpush1.bf16.msra.mxu1 %v4046_v11  ;;  %v4073_v29 = vld [vmem:[%s5836_s3 + $0xec] ss:$16 sps:$4 sm:$0xff]   ;;  %v4075_v30 = vld [vmem:[%s5836_s3 + $0xe0] ss:$16 sps:$4 sm:$0xff]   ;;  %v4076_v31 = vld [vmem:[%s5836_s3 + $0xe8] ss:$16 sps:$4 sm:$0xff]  }
  0x1d   :  { %2251 = vmatprep.subr.bf16.mxu0 %v4047_v12  ;;  %2415 = vmatprep.subr.bf16.mxu1 %v4049_v13  ;;  %v4077_v32 = vld [vmem:[%s5836_s3 + $0x104] ss:$16 sps:$4 sm:$0xff]   ;;  %v4079_v33 = vld [vmem:[%s5836_s3 + $0x10c] ss:$16 sps:$4 sm:$0xff]   ;;  %v4081_v34 = vld [vmem:[%s5836_s3 + $0x100] ss:$16 sps:$4 sm:$0xff]  }
  0x1e   :  { %v4082_v35 = vld [vmem:[%s5836_s3 + $0x108] ss:$16 sps:$4 sm:$0xff]   ;;  %v4083_v36 = vld [vmem:[%s5836_s3 + $0x124] ss:$16 sps:$4 sm:$0xff]   ;;  %v4085_v37 = vld [vmem:[%s5836_s3 + $0x12c] ss:$16 sps:$4 sm:$0xff]  }
  0x1f   :  { %v4087_v38 = vld [vmem:[%s5836_s3 + $0x120] ss:$16 sps:$4 sm:$0xff]   ;;  %v4088_v39 = vld [vmem:[%s5836_s3 + $0x128] ss:$16 sps:$4 sm:$0xff]   ;;  %v4089_v40 = vld [vmem:[%s5836_s3 + $0x144] ss:$16 sps:$4 sm:$0xff]  }
  0x20   :  { %2252 = vmatpush1.bf16.msra.mxu0 %v4051_v14  ;;  %2416 = vmatpush1.bf16.msra.mxu1 %v4052_v15  ;;  %v4091_v41 = vld [vmem:[%s5836_s3 + $0x14c] ss:$16 sps:$4 sm:$0xff]   ;;  %v4093_v42 = vld [vmem:[%s5836_s3 + $0x140] ss:$16 sps:$4 sm:$0xff]   ;;  %v4094_v43 = vld [vmem:[%s5836_s3 + $0x148] ss:$16 sps:$4 sm:$0xff]  }
  0x21   :  { %2253 = vmatprep.subr.bf16.mxu0 %v4053_v16  ;;  %2417 = vmatprep.subr.bf16.mxu1 %v4055_v17  ;;  %v4095_v44 = vld [vmem:[%s5836_s3 + $0x164] ss:$16 sps:$4 sm:$0xff]   ;;  %v4097_v45 = vld [vmem:[%s5836_s3 + $0x16c] ss:$16 sps:$4 sm:$0xff]   ;;  %v4099_v46 = vld [vmem:[%s5836_s3 + $0x160] ss:$16 sps:$4 sm:$0xff]  }
  0x22   :  { %v4100_v47 = vld [vmem:[%s5836_s3 + $0x168] ss:$16 sps:$4 sm:$0xff]   ;;  %v4101_v48 = vld [vmem:[%s5836_s3 + $0x184] ss:$16 sps:$4 sm:$0xff]   ;;  %v4103_v49 = vld [vmem:[%s5836_s3 + $0x18c] ss:$16 sps:$4 sm:$0xff]  }
  0x23   :  { %v4105_v50 = vld [vmem:[%s5836_s3 + $0x180] ss:$16 sps:$4 sm:$0xff]   ;;  %v4106_v51 = vld [vmem:[%s5836_s3 + $0x188] ss:$16 sps:$4 sm:$0xff]   ;;  %v4107_v52 = vld [vmem:[%s5836_s3 + $0x1a4] ss:$16 sps:$4 sm:$0xff]  }
  0x24   :  { %2254 = vmatpush1.bf16.msra.mxu0 %v4057_v18  ;;  %2418 = vmatpush1.bf16.msra.mxu1 %v4058_v19  ;;  %v4109_v53 = vld [vmem:[%s5836_s3 + $0x1ac] ss:$16 sps:$4 sm:$0xff]   ;;  %v4111_v54 = vld [vmem:[%s5836_s3 + $0x1a0] ss:$16 sps:$4 sm:$0xff]   ;;  %v4112_v55 = vld [vmem:[%s5836_s3 + $0x1a8] ss:$16 sps:$4 sm:$0xff]  }
  0x25   :  { %2255 = vmatprep.subr.bf16.mxu0 %v4059_v20  ;;  %2419 = vmatprep.subr.bf16.mxu1 %v4061_v21  ;;  %v4125_v56 = vld [vmem:[%s5834_s1] sm:$0xff]   ;;  %v4115_v58 = vld [vmem:[%s5836_s3 + $0x1cc] ss:$16 sps:$4 sm:$0xff]   ;;  %v4127_v60 = vld [vmem:[%s5834_s1 + $0x10] sm:$0xff]   ;;  %vm656_vm0 = vcmask 1041409   ;;  %vm3044_vm1 = vcmask 523264  }
  0x26   :  { %v4113_v57 = vld [vmem:[%s5836_s3 + $0x1c4] ss:$16 sps:$4 sm:$0xff]   ;;  %v4126_v59 = vld [vmem:[%s5834_s1 + $0x8] sm:$0xff]   ;;  %v4128_v61 = vld [vmem:[%s5834_s1 + $0x18] sm:$0xff]   ;;  %v220_v4 = vmax.bf16 %v4127_v60, %v4125_v56 }
  0x27   :  { %v4129_v62 = vld [vmem:[%s5834_s1 + $0x20] sm:$0xff]   ;;  %v4130_v63 = vld [vmem:[%s5834_s1 + $0x28] sm:$0xff]   ;;  %v4133_v2 = vld [vmem:[%s5834_s1 + $0x70] sm:$0xff]   ;;  %v221_v5 = vmax.bf16 %v4128_v61, %v4126_v59 }
  0x28   :  { %2256 = vmatpush1.bf16.msra.mxu0 %v4063_v22  ;;  %2420 = vmatpush1.bf16.msra.mxu1 %v4064_v23  ;;  %v4131_v0 = vld [vmem:[%s5834_s1 + $0x60] sm:$0xff]   ;;  %v4132_v1 = vld [vmem:[%s5834_s1 + $0x68] sm:$0xff]   ;;  %v4134_v3 = vld [vmem:[%s5834_s1 + $0x78] sm:$0xff]   ;;  %v222_v12 = vmax.bf16 %v4129_v62, %v220_v4 }
  0x29   :  { %2257 = vmatprep.subr.bf16.mxu0 %v4065_v24  ;;  %2421 = vmatprep.subr.bf16.mxu1 %v4067_v25  ;;  %v4117_v6 = vld [vmem:[%s5836_s3 + $0x1c0] ss:$16 sps:$4 sm:$0xff]   ;;  %v4118_v7 = vld [vmem:[%s5836_s3 + $0x1c8] ss:$16 sps:$4 sm:$0xff]   ;;  %v4119_v10 = vld [vmem:[%s5836_s3 + $0x1e4] ss:$16 sps:$4 sm:$0xff]   ;;  %v223_v13 = vmax.bf16 %v4130_v63, %v221_v5  ;;  %v235_v14 = vmax.bf16 %v4133_v2, %v4131_v0  ;;  %v236_v15 = vmax.bf16 %v4134_v3, %v4132_v1 }
  0x2a   :  { %v4135_v8 = vld [vmem:[%s5834_s1 + $0x80] sm:$0xff]   ;;  %v4136_v9 = vld [vmem:[%s5834_s1 + $0x88] sm:$0xff]   ;;  %v4157_v0 = vld [vmem:[%s5833_s0 + $0x10] sm:$0xff]  }
  0x2b   :  { %v4121_v11 = vld [vmem:[%s5836_s3 + $0x1ec] ss:$16 sps:$4 sm:$0xff]   ;;  %v224_v16 = vmax.bf16 %v223_v13, %v222_v12  ;;  %v237_v17 = vmax.bf16 %v4135_v8, %v235_v14  ;;  %v238_v18 = vmax.bf16 %v4136_v9, %v236_v15  ;;  %v4123_v19 = vld [vmem:[%s5836_s3 + $0x1e0] ss:$16 sps:$4 sm:$0xff]   ;;  %v4124_v20 = vld [vmem:[%s5836_s3 + $0x1e8] ss:$16 sps:$4 sm:$0xff]  }
  0x2c   :  { %2258 = vmatpush1.bf16.msra.mxu0 %v4069_v26  ;;  %2422 = vmatpush1.bf16.msra.mxu1 %v4070_v27  ;;  %v4137_v27 = vld [vmem:[%s5834_s1 + $0x30] sm:$0xff]   ;;  %v4156_v60 = vld [vmem:[%s5833_s0 + $0x8] sm:$0xff]   ;;  %v4158_v3 = vld [vmem:[%s5833_s0 + $0x18] sm:$0xff]  }
  0x2d   :  { %2259 = vmatprep.subr.bf16.mxu0 %v4071_v28  ;;  %2423 = vmatprep.subr.bf16.mxu1 %v4073_v29  ;;  %v225_v21 = vunpack.i.l.bf16 %v224_v16  ;;  %v226_v22 = vunpack.i.h.bf16 %v224_v16  ;;  %v239_v23 = vmax.bf16 %v238_v18, %v237_v17  ;;  %v4159_v4 = vld [vmem:[%s5833_s0 + $0x20] sm:$0xff]  }
  0x2f   :  { %v227_v24 = vmax.f32 %v225_v21, %v226_v22  ;;  %v240_v25 = vunpack.i.l.bf16 %v239_v23  ;;  %v241_v26 = vunpack.i.h.bf16 %v239_v23 }
  0x30   :  { %2260 = vmatpush1.bf16.msra.mxu0 %v4075_v30  ;;  %2424 = vmatpush1.bf16.msra.mxu1 %v4076_v31  ;;  %v4138_v30 = vld [vmem:[%s5834_s1 + $0x38] sm:$0xff]   ;;  %v4139_v31 = vld [vmem:[%s5834_s1 + $0x40] sm:$0xff]  }
  0x31   :  { %2261 = vmatprep.subr.bf16.mxu0 %v4077_v32  ;;  %2425 = vmatprep.subr.bf16.mxu1 %v4079_v33  ;;  %v228_v28 = vrot.slane %v227_v24, 4  ;;  %v242_v29 = vmax.f32 %v240_v25, %v241_v26  ;;  %v4140_v32 = vld [vmem:[%s5834_s1 + $0x48] sm:$0xff]   ;;  %v4141_v33 = vld [vmem:[%s5834_s1 + $0x50] sm:$0xff]  }
  0x34   :  { %2262 = vmatpush1.bf16.msra.mxu0 %v4081_v34  ;;  %2426 = vmatpush1.bf16.msra.mxu1 %v4082_v35  ;;  %v4142_v34 = vld [vmem:[%s5834_s1 + $0x58] sm:$0xff]   ;;  %v4143_v35 = vld [vmem:[%s5834_s1 + $0x90] sm:$0xff]  }
  0x35   :  { %2263 = vmatprep.subr.bf16.mxu0 %v4083_v36  ;;  %2427 = vmatprep.subr.bf16.mxu1 %v4085_v37  ;;  %v229_v36 = vmax.f32 %v227_v24, %v228_v28  ;;  %v243_v37 = vrot.slane %v242_v29, 4 }
  0x38   :  { %2264 = vmatpush1.bf16.msra.mxu0 %v4087_v38  ;;  %2428 = vmatpush1.bf16.msra.mxu1 %v4088_v39  ;;  %v4144_v38 = vld [vmem:[%s5834_s1 + $0x98] sm:$0xff]   ;;  %v4145_v39 = vld [vmem:[%s5834_s1 + $0xa0] sm:$0xff]  }
  0x39   :  { %2265 = vmatprep.subr.bf16.mxu0 %v4089_v40  ;;  %2429 = vmatprep.subr.bf16.mxu1 %v4091_v41  ;;  %v4146_v40 = vld [vmem:[%s5834_s1 + $0xa8] sm:$0xff]   ;;  %v346_v41 = vmax.bf16 %v4139_v31, %v4137_v27 }
  0x3c   :  { %2266 = vmatpush1.bf16.msra.mxu0 %v4093_v42  ;;  %2430 = vmatpush1.bf16.msra.mxu1 %v4094_v43  ;;  %v347_v42 = vmax.bf16 %v4140_v32, %v4138_v30  ;;  %v4147_v43 = vld [vmem:[%s5834_s1 + $0xb0] sm:$0xff]  }
  0x3d   :  { %2267 = vmatprep.subr.bf16.mxu0 %v4095_v44  ;;  %2431 = vmatprep.subr.bf16.mxu1 %v4097_v45  ;;  %v4148_v44 = vld [vmem:[%s5834_s1 + $0xb8] sm:$0xff]   ;;  %v244_v45 = vmax.f32 %v242_v29, %v243_v37 }
  0x40   :  { %2268 = vmatpush1.bf16.msra.mxu0 %v4099_v46  ;;  %2432 = vmatpush1.bf16.msra.mxu1 %v4100_v47  ;;  %v348_v46 = vmax.bf16 %v4141_v33, %v346_v41  ;;  %v349_v47 = vmax.bf16 %v4142_v34, %v347_v42 }
  0x41   :  { %2269 = vmatprep.subr.bf16.mxu0 %v4101_v48  ;;  %2433 = vmatprep.subr.bf16.mxu1 %v4103_v49  ;;  %v4151_v48 = vld [vmem:[%s5836_s3 + $0x204] ss:$16 sps:$4 sm:$0xff]   ;;  %v230_v49 = vrot.slane %v229_v36, 2 }
  0x43   :  { %v231_v61 = vmax.f32 %v229_v36, %v230_v49 }
  0x44   :  { %2270 = vmatpush1.bf16.msra.mxu0 %v4105_v50  ;;  %2434 = vmatpush1.bf16.msra.mxu1 %v4106_v51  ;;  %v361_v50 = vmax.bf16 %v4145_v39, %v4143_v35  ;;  %v362_v51 = vmax.bf16 %v4146_v40, %v4144_v38 }
  0x45   :  { %2271 = vmatprep.subr.bf16.mxu0 %v4107_v52  ;;  %2435 = vmatprep.subr.bf16.mxu1 %v4109_v53  ;;  %v350_v52 = vmax.bf16 %v349_v47, %v348_v46  ;;  %v4154_v53 = vld [vmem:[%s5836_s3 + $0x20c] ss:$16 sps:$4 sm:$0xff]   ;;  %v232_v8 = vrot.slane %v231_v61, 1 }
  0x46   :  { %v364_v56 = vmax.bf16 %v4148_v44, %v362_v51 }
  0x47   :  { %v352_v59 = vunpack.i.h.bf16 %v350_v52 }
  0x48   :  { %2272 = vmatpush1.bf16.msra.mxu0 %v4111_v54  ;;  %2436 = vmatpush1.bf16.msra.mxu1 %v4112_v55  ;;  %v4155_v54 = vld [vmem:[%s5833_s0] sm:$0xff]   ;;  %v363_v55 = vmax.bf16 %v4147_v43, %v361_v50 }
  0x49   :  { %2273 = vmatprep.subr.bf16.mxu0 %v4113_v57  ;;  %2437 = vmatprep.subr.bf16.mxu1 %v4115_v58  ;;  %v245_v57 = vrot.slane %v244_v45, 2  ;;  %v351_v58 = vunpack.i.l.bf16 %v350_v52 }
  0x4a   :  { %v365_v62 = vmax.bf16 %v364_v56, %v363_v55 }
  0x4b   :  { %v353_v63 = vmax.f32 %v351_v58, %v352_v59  ;;  %v246_v9 = vmax.f32 %v244_v45, %v245_v57 }
  0x4c   :  { %2274 = vmatpush1.bf16.msra.mxu0 %v4117_v6  ;;  %2438 = vmatpush1.bf16.msra.mxu1 %v4118_v7  ;;  %v366_v1 = vunpack.i.l.bf16 %v365_v62  ;;  %v367_v2 = vunpack.i.h.bf16 %v365_v62  ;;  %v4160_v6 = vld [vmem:[%s5833_s0 + $0x28] sm:$0xff]   ;;  %v100_v7 = vmax.bf16 %v4157_v0, %v4155_v54  ;;  %v4149_v62 = vld [vmem:[%s5836_s3 + $0x200] ss:$16 sps:$4 sm:$0xff]  }
  0x4d   :  { %2275 = vmatprep.subr.bf16.mxu0 %v4119_v10  ;;  %2439 = vmatprep.subr.bf16.mxu1 %v4121_v11  ;;  %v354_v5 = vrot.slane %v353_v63, 4  ;;  %v112_v13 = vmax.bf16 %v4160_v6, %v4158_v3  ;;  %v4152_v0 = vld [vmem:[%s5836_s3 + $0x208] ss:$16 sps:$4 sm:$0xff]  }
  0x4e   :  { %v368_v10 = vmax.f32 %v366_v1, %v367_v2  ;;  %v101_v12 = vmax.bf16 %v4156_v60, %v100_v7  ;;  %v4163_v2 = vld [vmem:[%s5836_s3 + $0x224] ss:$16 sps:$4 sm:$0xff]  }
  0x4f   :  { %v355_v11 = vmax.f32 %v353_v63, %v354_v5  ;;  %v113_v18 = vmax.bf16 %v4159_v4, %v112_v13  ;;  %v4166_v4 = vld [vmem:[%s5836_s3 + $0x22c] ss:$16 sps:$4 sm:$0xff]   ;;  %v4167_v13 = vld [vmem:[%s5836_s3 + $0x240] ss:$16 sps:$4 sm:$0xff]  }
  0x50   :  { %2276 = vmatpush1.bf16.msra.mxu0 %v4123_v19  ;;  %2440 = vmatpush1.bf16.msra.mxu1 %v4124_v20  ;;  %v369_v14 = vrot.slane %v368_v10, 4  ;;  %v102_v16 = vunpack.i.l.bf16 %v101_v12  ;;  %v103_v17 = vunpack.i.h.bf16 %v101_v12  ;;  %v233_v19 = vmax.f32 %v231_v61, %v232_v8  ;;  %v4161_v8 = vld [vmem:[%s5836_s3 + $0x220] ss:$16 sps:$4 sm:$0xff]  }
  0x51   :  { %2286 = vmatprep.subr.bf16.mxu0 %v4151_v48  ;;  %2450 = vmatprep.subr.bf16.mxu1 %v4154_v53  ;;  %v356_v15 = vrot.slane %v355_v11, 2  ;;  %v247_v20 = vrot.slane %v246_v9, 1  ;;  %v114_v24 = vunpack.i.l.bf16 %v113_v18  ;;  %v115_v25 = vunpack.i.h.bf16 %v113_v18  ;;  %v4176_v18 = vld [vmem:[%s5836_s3 + $0x268] ss:$16 sps:$4 sm:$0xff]  }
  0x52   :  { %v370_v21 = vmax.f32 %v368_v10, %v369_v14  ;;  %v104_v23 = vmax.f32 %v102_v16, %v103_v17  ;;  %v234_v32 = vpack.i.bf16 %v233_v19, %v233_v19  ;;  %v4169_v10 = vld [vmem:[%s5836_s3 + $0x244] ss:$16 sps:$4 sm:$0xff]   ;;  %v4170_v14 = vld [vmem:[%s5836_s3 + $0x248] ss:$16 sps:$4 sm:$0xff]   ;;  %v4178_v16 = vld [vmem:[%s5836_s3 + $0x26c] ss:$16 sps:$4 sm:$0xff]  }
  0x53   :  { %v357_v22 = vmax.f32 %v355_v11, %v356_v15  ;;  %v116_v29 = vmax.f32 %v114_v24, %v115_v25  ;;  %v248_v30 = vmax.f32 %v246_v9, %v247_v20  ;;  %v4164_v9 = vld [vmem:[%s5836_s3 + $0x228] ss:$16 sps:$4 sm:$0xff]   ;;  %v4172_v11 = vld [vmem:[%s5836_s3 + $0x24c] ss:$16 sps:$4 sm:$0xff]   ;;  %v4175_v15 = vld [vmem:[%s5836_s3 + $0x264] ss:$16 sps:$4 sm:$0xff]  }
  0x54   :  { %v371_v26 = vrot.slane %v370_v21, 2  ;;  %v105_v28 = vrot.slane %v104_v23, 4  ;;  %v676_v56 = vunpack.c.l.b16 %v234_v32  ;;  %v4173_v17 = vld [vmem:[%s5836_s3 + $0x260] ss:$16 sps:$4 sm:$0xff]   ;;  %v4181_v19 = vld [vmem:[%s5836_s3 + $0x284] ss:$16 sps:$4 sm:$0xff]  }
  0x55   :  { %v358_v27 = vrot.slane %v357_v22, 1  ;;  %v117_v35 = vrot.slane %v116_v29, 4  ;;  %v249_v40 = vpack.i.bf16 %v248_v30, %v248_v30  ;;  %v4184_v20 = vld [vmem:[%s5836_s3 + $0x28c] ss:$16 sps:$4 sm:$0xff]   ;;  %v4185_v25 = vld [vmem:[%s5836_s3 + $0x2a0] ss:$16 sps:$4 sm:$0xff]  }
  0x56   :  { %v372_v31 = vmax.f32 %v370_v21, %v371_v26  ;;  %v106_v34 = vmax.f32 %v104_v23, %v105_v28  ;;  %v4179_v21 = vld [vmem:[%s5836_s3 + $0x280] ss:$16 sps:$4 sm:$0xff]   ;;  %v4187_v23 = vld [vmem:[%s5836_s3 + $0x2a4] ss:$16 sps:$4 sm:$0xff]   ;;  %v4190_v24 = vld [vmem:[%s5836_s3 + $0x2ac] ss:$16 sps:$4 sm:$0xff]  }
  0x57   :  { %v359_v33 = vmax.f32 %v357_v22, %v358_v27  ;;  %v118_v39 = vmax.f32 %v116_v29, %v117_v35  ;;  %v677_v57 = vunpack.c.l.b16 %v249_v40  ;;  %v4182_v22 = vld [vmem:[%s5836_s3 + $0x288] ss:$16 sps:$4 sm:$0xff]   ;;  %v4193_v27 = vld [vmem:[%s5836_s3 + $0x2c4] ss:$16 sps:$4 sm:$0xff]   ;;  %v4196_v28 = vld [vmem:[%s5836_s3 + $0x2cc] ss:$16 sps:$4 sm:$0xff]  }
  0x58   :  { %v373_v36 = vrot.slane %v372_v31, 1  ;;  %v107_v38 = vrot.slane %v106_v34, 2  ;;  %v4188_v26 = vld [vmem:[%s5836_s3 + $0x2a8] ss:$16 sps:$4 sm:$0xff]   ;;  %v4191_v29 = vld [vmem:[%s5836_s3 + $0x2c0] ss:$16 sps:$4 sm:$0xff]  }
  0x59   :  { %v360_v37 = vpack.i.bf16 %v359_v33, %v359_v33  ;;  %v119_v44 = vrot.slane %v118_v39, 2  ;;  %v678_v63 = vsel %vm656_vm0, %v677_v57, %v676_v56  ;;  %v4194_v30 = vld [vmem:[%s5836_s3 + $0x2c8] ss:$16 sps:$4 sm:$0xff]   ;;  %v4199_v33 = vld [vmem:[%s5836_s3 + $0x2e4] ss:$16 sps:$4 sm:$0xff]  }
  0x5a   :  { %v374_v41 = vmax.f32 %v372_v31, %v373_v36  ;;  %v108_v43 = vmax.f32 %v106_v34, %v107_v38  ;;  %v679_v7 = vpack.c.b16 %v678_v63, %v678_v63  ;;  %v4257_v31 = vld [vmem:[%s5835_s2] sm:$0xff]   ;;  %v4202_v34 = vld [vmem:[%s5836_s3 + $0x2ec] ss:$16 sps:$4 sm:$0xff]   ;;  %v4259_v35 = vld [vmem:[%s5835_s2 + $0x10] sm:$0xff]  }
  0x5b   :  { %v376_v42 = vmax.bf16 %v360_v37, %v234_v32  ;;  %v120_v47 = vmax.f32 %v118_v39, %v119_v44  ;;  %v683_v5 = vunpack.c.l.b16 %v360_v37  ;;  %v4258_v32 = vld [vmem:[%s5835_s2 + $0x8] sm:$0xff]   ;;  %v4260_v36 = vld [vmem:[%s5835_s2 + $0x18] sm:$0xff]   ;;  %v4261_v37 = vld [vmem:[%s5835_s2 + $0x60] sm:$0xff]  }
  0x5c   :  { %v375_v45 = vpack.i.bf16 %v374_v41, %v374_v41  ;;  %v109_v46 = vrot.slane %v108_v43, 1  ;;  %v4262_v38 = vld [vmem:[%s5835_s2 + $0x68] sm:$0xff]   ;;  %v4263_v39 = vld [vmem:[%s5835_s2 + $0x70] sm:$0xff]   ;;  %v442_v41 = vmax.bf16 %v4259_v35, %v4257_v31  ;;  %v4265_v57 = vld [vmem:[%s5835_s2 + $0x20] sm:$0xff]  }
  0x5d   :  { %v662_v49 = vunpack.c.l.b16 %v376_v42  ;;  %v121_v51 = vrot.slane %v120_v47, 1  ;;  %v443_v42 = vmax.bf16 %v4260_v36, %v4258_v32  ;;  %v4200_v44 = vld [vmem:[%s5836_s3 + $0x2e8] ss:$16 sps:$4 sm:$0xff]   ;;  %v4223_v31 = vld [vmem:[%s5836_s3 + $0x364] ss:$16 sps:$4 sm:$0xff]  }
  0x5e   :  { %v377_v48 = vmax.bf16 %v375_v45, %v249_v40  ;;  %v110_v50 = vmax.f32 %v108_v43, %v109_v46  ;;  %v684_v6 = vunpack.c.l.b16 %v375_v45  ;;  %v4264_v40 = vld [vmem:[%s5835_s2 + $0x78] sm:$0xff]   ;;  %v4197_v43 = vld [vmem:[%s5836_s3 + $0x2e0] ss:$16 sps:$4 sm:$0xff]   ;;  %v455_v45 = vmax.bf16 %v4263_v39, %v4261_v37  ;;  %v4278_v36 = vld [vmem:[%s5835_s2 + $0xa8] sm:$0xff]  }
  0x5f   :  { %v122_v54 = vmax.f32 %v120_v47, %v121_v51  ;;  %v456_v46 = vmax.bf16 %v4264_v40, %v4262_v38  ;;  %v4205_v47 = vld [vmem:[%s5836_s3 + $0x304] ss:$16 sps:$4 sm:$0xff]   ;;  %v4268_v63 = vld [vmem:[%s5835_s2 + $0x38] sm:$0xff]  }
  0x60   :  { %v663_v52 = vunpack.c.l.b16 %v377_v48  ;;  %v111_v53 = vpack.i.bf16 %v110_v50, %v110_v50  ;;  %v4972_v12 = vsel %vm656_vm0, %v684_v6, %v683_v5  ;;  %v4208_v48 = vld [vmem:[%s5836_s3 + $0x30c] ss:$16 sps:$4 sm:$0xff]   ;;  %v4279_v37 = vld [vmem:[%s5835_s2 + $0xb0] sm:$0xff]  }
  0x61   :  { %v123_v59 = vpack.i.bf16 %v122_v54, %v122_v54  ;;  %v457_v50 = vmax.bf16 %v456_v46, %v455_v45  ;;  %v4206_v54 = vld [vmem:[%s5836_s3 + $0x308] ss:$16 sps:$4 sm:$0xff]   ;;  %v4226_v40 = vld [vmem:[%s5836_s3 + $0x36c] ss:$16 sps:$4 sm:$0xff]  }
  0x62   :  { %v664_v55 = vsel %vm656_vm0, %v663_v52, %v662_v49  ;;  %v654_v60 = vunpack.c.l.b16 %v111_v53  ;;  %v444_v49 = vmax.bf16 %v443_v42, %v442_v41  ;;  %v4203_v53 = vld [vmem:[%s5836_s3 + $0x300] ss:$16 sps:$4 sm:$0xff]   ;;  %v4280_v38 = vld [vmem:[%s5835_s2 + $0xb8] sm:$0xff]  }
  0x63   :  { %v665_v58 = vpack.c.b16 %v664_v55, %v664_v55  ;;  %v655_v61 = vunpack.c.l.b16 %v123_v59  ;;  %v458_v55 = vunpack.i.l.bf16 %v457_v50  ;;  %v459_v56 = vunpack.i.h.bf16 %v457_v50  ;;  %v4211_v59 = vld [vmem:[%s5836_s3 + $0x324] ss:$16 sps:$4 sm:$0xff]   ;;  %v4224_v50 = vld [vmem:[%s5836_s3 + $0x368] ss:$16 sps:$4 sm:$0xff]  }
  0x64   :  { %v445_v51 = vunpack.i.l.bf16 %v444_v49  ;;  %v446_v52 = vunpack.i.h.bf16 %v444_v49  ;;  %v636_v49 = vmax.bf16 %v4280_v38, %v4278_v36  ;;  %v4245_v38 = vld [vmem:[%s5836_s3 + $0x3e0] ss:$16 sps:$4 sm:$0xff]  }
  0x65   :  { %2277 = vmatprep.mubr.bf16.mxu0 %v665_v58  ;;  %2441 = vmatprep.mubr.bf16.mxu1 %v665_v58  ;;  %v657_v1 = vsel %vm656_vm0, %v655_v61, %v654_v60  ;;  %v4266_v58 = vld [vmem:[%s5835_s2 + $0x28] sm:$0xff]  }
  0x66   :  { %v658_v3 = vpack.c.b16 %v657_v1, %v657_v1  ;;  %v4214_v60 = vld [vmem:[%s5836_s3 + $0x32c] ss:$16 sps:$4 sm:$0xff]   ;;  %v447_v61 = vmax.f32 %v445_v51, %v446_v52  ;;  %v460_v1 = vmax.f32 %v458_v55, %v459_v56  ;;  %v4229_v51 = vld [vmem:[%s5836_s3 + $0x384] ss:$16 sps:$4 sm:$0xff]  }
  0x67   :  { %v4232_v55 = vld [vmem:[%s5836_s3 + $0x38c] ss:$16 sps:$4 sm:$0xff]  }
  0x68   :  { %2278 = vmatmul.mubr.bf16.vlgmr.msra.gmra.mrb[0].mxu0 %v658_v3  ;;  %2442 = vmatmul.mubr.bf16.vlgmr.msra.gmra.mrb[0].mxu1 %v658_v3  ;;  %v4271_v3 = vld [vmem:[%s5835_s2 + $0x90] sm:$0xff]   ;;  %v448_v5 = vrot.slane %v447_v61, 4 }
  0x69   :  { %2287 = vmatpush1.bf16.msra.mxu0 %v4149_v62  ;;  %2451 = vmatpush1.bf16.msra.mxu1 %v4152_v0  ;;  %v4267_v62 = vld [vmem:[%s5835_s2 + $0x30] sm:$0xff]   ;;  %v4269_v0 = vld [vmem:[%s5835_s2 + $0x80] sm:$0xff]  }
  0x6a   :  { %2288 = vmatprep.subr.bf16.mxu0 %v4163_v2  ;;  %2452 = vmatprep.subr.bf16.mxu1 %v4166_v4  ;;  %v4270_v2 = vld [vmem:[%s5835_s2 + $0x88] sm:$0xff]   ;;  %v4272_v4 = vld [vmem:[%s5835_s2 + $0x98] sm:$0xff]   ;;  %v532_v6 = vmax.bf16 %v4267_v62, %v4265_v57  ;;  %v4227_v62 = vld [vmem:[%s5836_s3 + $0x380] ss:$16 sps:$4 sm:$0xff]  }
  0x6b   :  { %2318 = vmatprep.mubr.bf16.mxu0 %v679_v7  ;;  %2482 = vmatprep.mubr.bf16.mxu1 %v679_v7  ;;  %v533_v7 = vmax.bf16 %v4268_v63, %v4266_v58 }
  0x6d   :  { %2289 = vmatpush1.bf16.msra.mxu0 %v4161_v8  ;;  %2453 = vmatpush1.bf16.msra.mxu1 %v4164_v9  ;;  %v4273_v8 = vld [vmem:[%s5835_s2 + $0x40] sm:$0xff]  }
  0x6e   :  { %2290 = vmatprep.subr.bf16.mxu0 %v4169_v10  ;;  %2454 = vmatprep.subr.bf16.mxu1 %v4172_v11  ;;  %v4209_v9 = vld [vmem:[%s5836_s3 + $0x320] ss:$16 sps:$4 sm:$0xff]   ;;  %v4212_v10 = vld [vmem:[%s5836_s3 + $0x328] ss:$16 sps:$4 sm:$0xff]   ;;  %v461_v11 = vrot.slane %v460_v1, 4 }
  0x71   :  { %2291 = vmatpush1.bf16.msra.mxu0 %v4167_v13  ;;  %2455 = vmatpush1.bf16.msra.mxu1 %v4170_v14  ;;  %v545_v13 = vmax.bf16 %v4271_v3, %v4269_v0  ;;  %v546_v14 = vmax.bf16 %v4272_v4, %v4270_v2  ;;  %v4230_v2 = vld [vmem:[%s5836_s3 + $0x388] ss:$16 sps:$4 sm:$0xff]   ;;  %v4235_v3 = vld [vmem:[%s5836_s3 + $0x3a4] ss:$16 sps:$4 sm:$0xff]  }
  0x72   :  { %2292 = vmatprep.subr.bf16.mxu0 %v4175_v15  ;;  %2456 = vmatprep.subr.bf16.mxu1 %v4178_v16  ;;  %v4274_v15 = vld [vmem:[%s5835_s2 + $0x48] sm:$0xff]   ;;  %v4217_v16 = vld [vmem:[%s5836_s3 + $0x344] ss:$16 sps:$4 sm:$0xff]  }
  0x75   :  { %2293 = vmatpush1.bf16.msra.mxu0 %v4173_v17  ;;  %2457 = vmatpush1.bf16.msra.mxu1 %v4176_v18  ;;  %v4220_v17 = vld [vmem:[%s5836_s3 + $0x34c] ss:$16 sps:$4 sm:$0xff]   ;;  %v449_v18 = vmax.f32 %v447_v61, %v448_v5 }
  0x76   :  { %2294 = vmatprep.subr.bf16.mxu0 %v4181_v19  ;;  %2458 = vmatprep.subr.bf16.mxu1 %v4184_v20  ;;  %v534_v19 = vmax.bf16 %v533_v7, %v532_v6  ;;  %v547_v20 = vmax.bf16 %v546_v14, %v545_v13  ;;  %v4238_v6 = vld [vmem:[%s5836_s3 + $0x3ac] ss:$16 sps:$4 sm:$0xff]   ;;  %v4233_v14 = vld [vmem:[%s5836_s3 + $0x3a0] ss:$16 sps:$4 sm:$0xff]  }
  0x79   :  { %2295 = vmatpush1.bf16.msra.mxu0 %v4179_v21  ;;  %2459 = vmatpush1.bf16.msra.mxu1 %v4182_v22  ;;  %v462_v21 = vmax.f32 %v460_v1, %v461_v11  ;;  %v535_v22 = vunpack.i.l.bf16 %v534_v19 }
  0x7a   :  { %2296 = vmatprep.subr.bf16.mxu0 %v4187_v23  ;;  %2460 = vmatprep.subr.bf16.mxu1 %v4190_v24  ;;  %v536_v23 = vunpack.i.h.bf16 %v534_v19  ;;  %v4275_v24 = vld [vmem:[%s5835_s2 + $0x50] sm:$0xff]  }
  0x7b   :  { %v463_v41 = vrot.slane %v462_v21, 2 }
  0x7c   :  { %v537_v32 = vmax.f32 %v535_v22, %v536_v23 }
  0x7d   :  { %2297 = vmatpush1.bf16.msra.mxu0 %v4185_v25  ;;  %2461 = vmatpush1.bf16.msra.mxu1 %v4188_v26  ;;  %v4215_v25 = vld [vmem:[%s5836_s3 + $0x340] ss:$16 sps:$4 sm:$0xff]   ;;  %v4218_v26 = vld [vmem:[%s5836_s3 + $0x348] ss:$16 sps:$4 sm:$0xff]   ;;  %v464_v56 = vmax.f32 %v462_v21, %v463_v41  ;;  %v4253_v41 = vld [vmem:[%s5836_s3 + $0x404] ss:$16 sps:$4 sm:$0xff]  }
  0x7e   :  { %2298 = vmatprep.subr.bf16.mxu0 %v4193_v27  ;;  %2462 = vmatprep.subr.bf16.mxu1 %v4196_v28  ;;  %v450_v27 = vrot.slane %v449_v18, 2  ;;  %v548_v28 = vunpack.i.l.bf16 %v547_v20  ;;  %v538_v42 = vrot.slane %v537_v32, 4 }
  0x7f   :  { %v465_v7 = vrot.slane %v464_v56, 1 }
  0x81   :  { %2299 = vmatpush1.bf16.msra.mxu0 %v4191_v29  ;;  %2463 = vmatpush1.bf16.msra.mxu1 %v4194_v30  ;;  %v549_v29 = vunpack.i.h.bf16 %v547_v20  ;;  %v4276_v30 = vld [vmem:[%s5835_s2 + $0x58] sm:$0xff]   ;;  %v466_v21 = vmax.f32 %v464_v56, %v465_v7  ;;  %v4287_v7 = vld [vmem:[%s5836_s3 + $0x440] ss:$16 sps:$4 sm:$0xff]  }
  0x82   :  { %2300 = vmatprep.subr.bf16.mxu0 %v4199_v33  ;;  %2464 = vmatprep.subr.bf16.mxu1 %v4202_v34  ;;  %v4277_v33 = vld [vmem:[%s5835_s2 + $0xa0] sm:$0xff]   ;;  %v622_v34 = vmax.bf16 %v4275_v24, %v4273_v8  ;;  %v623_v39 = vmax.bf16 %v4276_v30, %v4274_v15  ;;  %v4244_v20 = vld [vmem:[%s5836_s3 + $0x3cc] ss:$16 sps:$4 sm:$0xff]  }
  0x83   :  { %v550_v35 = vmax.f32 %v548_v28, %v549_v29  ;;  %v635_v46 = vmax.bf16 %v4279_v37, %v4277_v33  ;;  %v4242_v29 = vld [vmem:[%s5836_s3 + $0x3c8] ss:$16 sps:$4 sm:$0xff]   ;;  %v4247_v30 = vld [vmem:[%s5836_s3 + $0x3e4] ss:$16 sps:$4 sm:$0xff]   ;;  %v467_v33 = vpack.i.bf16 %v466_v21, %v466_v21 }
  0x84   :  { %v624_v45 = vmax.bf16 %v623_v39, %v622_v34  ;;  %v4308_v21 = vld [vmem:[%s5836_s3 + $0x4a8] ss:$16 sps:$4 sm:$0xff]  }
  0x85   :  { %2301 = vmatpush1.bf16.msra.mxu0 %v4197_v43  ;;  %2465 = vmatpush1.bf16.msra.mxu1 %v4200_v44  ;;  %v451_v43 = vmax.f32 %v449_v18, %v450_v27  ;;  %v551_v44 = vrot.slane %v550_v35, 4  ;;  %v637_v58 = vmax.bf16 %v636_v49, %v635_v46  ;;  %v4241_v18 = vld [vmem:[%s5836_s3 + $0x3c4] ss:$16 sps:$4 sm:$0xff]   ;;  %v4239_v27 = vld [vmem:[%s5836_s3 + $0x3c0] ss:$16 sps:$4 sm:$0xff]   ;;  %v691_v49 = vunpack.c.l.b16 %v467_v33 }
  0x86   :  { %2302 = vmatprep.subr.bf16.mxu0 %v4205_v47  ;;  %2466 = vmatprep.subr.bf16.mxu1 %v4208_v48  ;;  %v4221_v47 = vld [vmem:[%s5836_s3 + $0x360] ss:$16 sps:$4 sm:$0xff]   ;;  %v539_v48 = vmax.f32 %v537_v32, %v538_v42  ;;  %v4250_v32 = vld [vmem:[%s5836_s3 + $0x3ec] ss:$16 sps:$4 sm:$0xff]  }
  0x87   :  { %v552_v52 = vmax.f32 %v550_v35, %v551_v44  ;;  %v638_v0 = vunpack.i.l.bf16 %v637_v58  ;;  %v639_v1 = vunpack.i.h.bf16 %v637_v58  ;;  %v4254_v58 = vld [vmem:[%s5836_s3 + $0x408] ss:$16 sps:$4 sm:$0xff]  }
  0x88   :  { %v540_v57 = vrot.slane %v539_v48, 2 }
  0x89   :  { %2303 = vmatpush1.bf16.msra.mxu0 %v4203_v53  ;;  %2467 = vmatpush1.bf16.msra.mxu1 %v4206_v54  ;;  %v625_v53 = vunpack.i.l.bf16 %v624_v45  ;;  %v626_v54 = vunpack.i.h.bf16 %v624_v45 }
  0x8a   :  { %2304 = vmatprep.subr.bf16.mxu0 %v4211_v59  ;;  %2468 = vmatprep.subr.bf16.mxu1 %v4214_v60  ;;  %v452_v59 = vrot.slane %v451_v43, 1  ;;  %v553_v60 = vrot.slane %v552_v52, 2  ;;  %v541_v63 = vmax.f32 %v539_v48, %v540_v57  ;;  %v4251_v57 = vld [vmem:[%s5836_s3 + $0x400] ss:$16 sps:$4 sm:$0xff]  }
  0x8b   :  { %v627_v61 = vmax.f32 %v625_v53, %v626_v54 }
  0x8c   :  { %v554_v4 = vmax.f32 %v552_v52, %v553_v60  ;;  %v542_v8 = vrot.slane %v541_v63, 1 }
  0x8d   :  { %2305 = vmatpush1.bf16.msra.mxu0 %v4209_v9  ;;  %2469 = vmatpush1.bf16.msra.mxu1 %v4212_v10  ;;  %v628_v5 = vrot.slane %v627_v61, 4  ;;  %v640_v9 = vmax.f32 %v638_v0, %v639_v1  ;;  %v453_v10 = vmax.f32 %v451_v43, %v452_v59  ;;  %v4256_v43 = vld [vmem:[%s5836_s3 + $0x40c] ss:$16 sps:$4 sm:$0xff]  }
  0x8e   :  { %2306 = vmatprep.subr.bf16.mxu0 %v4217_v16  ;;  %2470 = vmatprep.subr.bf16.mxu1 %v4220_v17  ;;  %v555_v11 = vrot.slane %v554_v4, 1  ;;  %v543_v15 = vmax.f32 %v541_v63, %v542_v8  ;;  %v4236_v17 = vld [vmem:[%s5836_s3 + $0x3a8] ss:$16 sps:$4 sm:$0xff]   ;;  %v4286_v1 = vld [vmem:[%s5836_s3 + $0x42c] ss:$16 sps:$4 sm:$0xff]  }
  0x8f   :  { %v629_v13 = vmax.f32 %v627_v61, %v628_v5  ;;  %v641_v16 = vrot.slane %v640_v9, 4  ;;  %v454_v24 = vpack.i.bf16 %v453_v10, %v453_v10  ;;  %v4289_v5 = vld [vmem:[%s5836_s3 + $0x444] ss:$16 sps:$4 sm:$0xff]   ;;  %v4290_v8 = vld [vmem:[%s5836_s3 + $0x448] ss:$16 sps:$4 sm:$0xff]  }
  0x90   :  { %v556_v22 = vmax.f32 %v554_v4, %v555_v11  ;;  %v4284_v4 = vld [vmem:[%s5836_s3 + $0x428] ss:$16 sps:$4 sm:$0xff]   ;;  %v4298_v10 = vld [vmem:[%s5836_s3 + $0x46c] ss:$16 sps:$4 sm:$0xff]   ;;  %v4293_v11 = vld [vmem:[%s5836_s3 + $0x460] ss:$16 sps:$4 sm:$0xff]  }
  0x91   :  { %2307 = vmatpush1.bf16.msra.mxu0 %v4215_v25  ;;  %2471 = vmatpush1.bf16.msra.mxu1 %v4218_v26  ;;  %v630_v19 = vrot.slane %v629_v13, 2  ;;  %v642_v23 = vmax.f32 %v640_v9, %v641_v16  ;;  %v544_v25 = vpack.i.bf16 %v543_v15, %v543_v15  ;;  %v690_v48 = vunpack.c.l.b16 %v454_v24  ;;  %v4295_v9 = vld [vmem:[%s5836_s3 + $0x464] ss:$16 sps:$4 sm:$0xff]   ;;  %v4304_v15 = vld [vmem:[%s5836_s3 + $0x48c] ss:$16 sps:$4 sm:$0xff]  }
  0x92   :  { %2308 = vmatprep.subr.bf16.mxu0 %v4223_v31  ;;  %2472 = vmatprep.subr.bf16.mxu1 %v4226_v40  ;;  %v557_v34 = vpack.i.bf16 %v556_v22, %v556_v22  ;;  %v4248_v40 = vld [vmem:[%s5836_s3 + $0x3e8] ss:$16 sps:$4 sm:$0xff]   ;;  %v4299_v16 = vld [vmem:[%s5836_s3 + $0x480] ss:$16 sps:$4 sm:$0xff]   ;;  %v4313_v22 = vld [vmem:[%s5836_s3 + $0x4c4] ss:$16 sps:$4 sm:$0xff]  }
  0x93   :  { %v631_v26 = vmax.f32 %v629_v13, %v630_v19  ;;  %v643_v28 = vrot.slane %v642_v23, 2  ;;  %v648_v37 = vmax.bf16 %v544_v25, %v454_v24  ;;  %v692_v59 = vsel %vm656_vm0, %v691_v49, %v690_v48  ;;  %v4296_v13 = vld [vmem:[%s5836_s3 + $0x468] ss:$16 sps:$4 sm:$0xff]   ;;  %v4310_v19 = vld [vmem:[%s5836_s3 + $0x4ac] ss:$16 sps:$4 sm:$0xff]  }
  0x94   :  { %v649_v45 = vmax.bf16 %v557_v34, %v467_v33  ;;  %v698_v56 = vunpack.c.l.b16 %v557_v34  ;;  %v4311_v24 = vld [vmem:[%s5836_s3 + $0x4c0] ss:$16 sps:$4 sm:$0xff]   ;;  %v4326_v33 = vld [vmem:[%s5836_s3 + $0x508] ss:$16 sps:$4 sm:$0xff]   ;;  %v4331_v34 = vld [vmem:[%s5836_s3 + $0x524] ss:$16 sps:$4 sm:$0xff]  }
  0x95   :  { %2309 = vmatpush1.bf16.msra.mxu0 %v4221_v47  ;;  %2473 = vmatpush1.bf16.msra.mxu1 %v4224_v50  ;;  %v632_v31 = vrot.slane %v631_v26, 1  ;;  %v644_v35 = vmax.f32 %v642_v23, %v643_v28  ;;  %v4316_v23 = vld [vmem:[%s5836_s3 + $0x4cc] ss:$16 sps:$4 sm:$0xff]   ;;  %v4317_v28 = vld [vmem:[%s5836_s3 + $0x4e0] ss:$16 sps:$4 sm:$0xff]  }
  0x96   :  { %2310 = vmatprep.subr.bf16.mxu0 %v4229_v51  ;;  %2474 = vmatprep.subr.bf16.mxu1 %v4232_v55  ;;  %v697_v55 = vunpack.c.l.b16 %v544_v25  ;;  %v4314_v25 = vld [vmem:[%s5836_s3 + $0x4c8] ss:$16 sps:$4 sm:$0xff]   ;;  %v4347_v48 = vld [vmem:[%s5836_s3 + $0x580] ss:$16 sps:$4 sm:$0xff]  }
  0x97   :  { %v633_v36 = vmax.f32 %v631_v26, %v632_v31  ;;  %v645_v39 = vrot.slane %v644_v35, 1  ;;  %v4319_v26 = vld [vmem:[%s5836_s3 + $0x4e4] ss:$16 sps:$4 sm:$0xff]   ;;  %v4328_v31 = vld [vmem:[%s5836_s3 + $0x50c] ss:$16 sps:$4 sm:$0xff]  }
  0x98   :  { %v5229_v63 = vsel %vm656_vm0, %v698_v56, %v697_v55  ;;  %v4350_v49 = vld [vmem:[%s5836_s3 + $0x588] ss:$16 sps:$4 sm:$0xff]   ;;  %v4364_v55 = vld [vmem:[%s5836_s3 + $0x5cc] ss:$16 sps:$4 sm:$0xff]   ;;  %v4359_v56 = vld [vmem:[%s5836_s3 + $0x5c0] ss:$16 sps:$4 sm:$0xff]  }
  0x99   :  { %2311 = vmatpush1.bf16.msra.mxu0 %v4227_v62  ;;  %2475 = vmatpush1.bf16.msra.mxu1 %v4230_v2  ;;  %v634_v42 = vpack.i.bf16 %v633_v36, %v633_v36  ;;  %v646_v44 = vmax.f32 %v644_v35, %v645_v39  ;;  %v4283_v62 = vld [vmem:[%s5836_s3 + $0x424] ss:$16 sps:$4 sm:$0xff]   ;;  %v693_v2 = vpack.c.b16 %v692_v59, %v692_v59  ;;  %v4334_v35 = vld [vmem:[%s5836_s3 + $0x52c] ss:$16 sps:$4 sm:$0xff]   ;;  %v4329_v36 = vld [vmem:[%s5836_s3 + $0x520] ss:$16 sps:$4 sm:$0xff]  }
  0x9a   :  { %2312 = vmatprep.subr.bf16.mxu0 %v4235_v3  ;;  %2476 = vmatprep.subr.bf16.mxu1 %v4238_v6  ;;  %v4281_v3 = vld [vmem:[%s5836_s3 + $0x420] ss:$16 sps:$4 sm:$0xff]   ;;  %v4292_v6 = vld [vmem:[%s5836_s3 + $0x44c] ss:$16 sps:$4 sm:$0xff]  }
  0x9b   :  { %v650_v46 = vmax.bf16 %v648_v37, %v634_v42  ;;  %v647_v47 = vpack.i.bf16 %v646_v44, %v646_v44  ;;  %v704_v52 = vunpack.c.l.b16 %v634_v42  ;;  %v4332_v37 = vld [vmem:[%s5836_s3 + $0x528] ss:$16 sps:$4 sm:$0xff]   ;;  %v4340_v39 = vld [vmem:[%s5836_s3 + $0x54c] ss:$16 sps:$4 sm:$0xff]   ;;  %v4343_v42 = vld [vmem:[%s5836_s3 + $0x564] ss:$16 sps:$4 sm:$0xff]  }
  0x9c   :  { %v4341_v44 = vld [vmem:[%s5836_s3 + $0x560] ss:$16 sps:$4 sm:$0xff]   ;;  %v4370_v59 = vld [vmem:[%s5836_s3 + $0x5ec] ss:$16 sps:$4 sm:$0xff]  }
  0x9d   :  { %2313 = vmatpush1.bf16.msra.mxu0 %v4233_v14  ;;  %2477 = vmatpush1.bf16.msra.mxu1 %v4236_v17  ;;  %v651_v50 = vmax.bf16 %v649_v45, %v647_v47  ;;  %v669_v51 = vunpack.c.l.b16 %v650_v46  ;;  %v705_v53 = vunpack.c.l.b16 %v647_v47  ;;  %v4301_v14 = vld [vmem:[%s5836_s3 + $0x484] ss:$16 sps:$4 sm:$0xff]   ;;  %v4302_v17 = vld [vmem:[%s5836_s3 + $0x488] ss:$16 sps:$4 sm:$0xff]   ;;  %v4352_v47 = vld [vmem:[%s5836_s3 + $0x58c] ss:$16 sps:$4 sm:$0xff]  }
  0x9e   :  { %2314 = vmatprep.subr.bf16.mxu0 %v4241_v18  ;;  %2478 = vmatprep.subr.bf16.mxu1 %v4244_v20  ;;  %v4307_v18 = vld [vmem:[%s5836_s3 + $0x4a4] ss:$16 sps:$4 sm:$0xff]   ;;  %v4305_v20 = vld [vmem:[%s5836_s3 + $0x4a0] ss:$16 sps:$4 sm:$0xff]   ;;  %v4344_v45 = vld [vmem:[%s5836_s3 + $0x568] ss:$16 sps:$4 sm:$0xff]  }
  0x9f   :  { %v670_v54 = vunpack.c.l.b16 %v651_v50  ;;  %v5222_v60 = vsel %vm656_vm0, %v705_v53, %v704_v52  ;;  %v4349_v46 = vld [vmem:[%s5836_s3 + $0x584] ss:$16 sps:$4 sm:$0xff]   ;;  %v4353_v52 = vld [vmem:[%s5836_s3 + $0x5a0] ss:$16 sps:$4 sm:$0xff]   ;;  %v4356_v53 = vld [vmem:[%s5836_s3 + $0x5a8] ss:$16 sps:$4 sm:$0xff]  }
  0xa0   :  { %v4355_v50 = vld [vmem:[%s5836_s3 + $0x5a4] ss:$16 sps:$4 sm:$0xff]  }
  0xa1   :  { %2315 = vmatpush1.bf16.msra.mxu0 %v4239_v27  ;;  %2479 = vmatpush1.bf16.msra.mxu1 %v4242_v29  ;;  %v671_v61 = vsel %vm656_vm0, %v670_v54, %v669_v51  ;;  %v4322_v27 = vld [vmem:[%s5836_s3 + $0x4ec] ss:$16 sps:$4 sm:$0xff]   ;;  %v4320_v29 = vld [vmem:[%s5836_s3 + $0x4e8] ss:$16 sps:$4 sm:$0xff]   ;;  %v4361_v54 = vld [vmem:[%s5836_s3 + $0x5c4] ss:$16 sps:$4 sm:$0xff]  }
  0xa2   :  { %2316 = vmatprep.subr.bf16.mxu0 %v4247_v30  ;;  %2480 = vmatprep.subr.bf16.mxu1 %v4250_v32  ;;  %v672_v0 = vpack.c.b16 %v671_v61, %v671_v61  ;;  %v4325_v30 = vld [vmem:[%s5836_s3 + $0x504] ss:$16 sps:$4 sm:$0xff]   ;;  %v4323_v32 = vld [vmem:[%s5836_s3 + $0x500] ss:$16 sps:$4 sm:$0xff]   ;;  %v4358_v51 = vld [vmem:[%s5836_s3 + $0x5ac] ss:$16 sps:$4 sm:$0xff]  }
  0xa3   :  { %v4365_v61 = vld [vmem:[%s5836_s3 + $0x5e0] ss:$16 sps:$4 sm:$0xff]  }
  0xa5   :  { %2317 = vmatpush1.bf16.msra.mxu0 %v4245_v38  ;;  %2481 = vmatpush1.bf16.msra.mxu1 %v4248_v40  ;;  %v4337_v38 = vld [vmem:[%s5836_s3 + $0x544] ss:$16 sps:$4 sm:$0xff]   ;;  %v4335_v40 = vld [vmem:[%s5836_s3 + $0x540] ss:$16 sps:$4 sm:$0xff]  }
  0xa6   :  { %2327 = vmatprep.subr.bf16.mxu0 %v4253_v41  ;;  %2491 = vmatprep.subr.bf16.mxu1 %v4256_v43  ;;  %v4338_v41 = vld [vmem:[%s5836_s3 + $0x548] ss:$16 sps:$4 sm:$0xff]   ;;  %v4346_v43 = vld [vmem:[%s5836_s3 + $0x56c] ss:$16 sps:$4 sm:$0xff]  }
  0xa8   :  { %2319 = vmatmul.mubr.bf16.vlgmr.msra.gmra.mrb[0].mxu0 %v672_v0  ;;  %2483 = vmatmul.mubr.bf16.vlgmr.msra.gmra.mrb[0].mxu1 %v672_v0  ;;  %v4373_v0 = vld [vmem:[%s5836_s3 + $0x604] ss:$16 sps:$4 sm:$0xff]  }
  0xa9   :  { %2328 = vmatpush1.bf16.msra.mxu0 %v4251_v57  ;;  %2492 = vmatpush1.bf16.msra.mxu1 %v4254_v58  ;;  %v4362_v57 = vld [vmem:[%s5836_s3 + $0x5c8] ss:$16 sps:$4 sm:$0xff]   ;;  %v4367_v58 = vld [vmem:[%s5836_s3 + $0x5e4] ss:$16 sps:$4 sm:$0xff]  }
  0xaa   :  { %2329 = vmatprep.subr.bf16.mxu0 %v4283_v62  ;;  %2493 = vmatprep.subr.bf16.mxu1 %v4286_v1  ;;  %v4368_v62 = vld [vmem:[%s5836_s3 + $0x5e8] ss:$16 sps:$4 sm:$0xff]   ;;  %v4376_v1 = vld [vmem:[%s5836_s3 + $0x60c] ss:$16 sps:$4 sm:$0xff]  }
  0xab   :  { %2359 = vmatprep.mubr.bf16.mxu0 %v693_v2  ;;  %2523 = vmatprep.mubr.bf16.mxu1 %v693_v2  ;;  %v4371_v2 = vld [vmem:[%s5836_s3 + $0x600] ss:$16 sps:$4 sm:$0xff]  }
  0xad   :  { %2330 = vmatpush1.bf16.msra.mxu0 %v4281_v3  ;;  %2494 = vmatpush1.bf16.msra.mxu1 %v4284_v4  ;;  %v4374_v3 = vld [vmem:[%s5836_s3 + $0x608] ss:$16 sps:$4 sm:$0xff]   ;;  %v686_v4 = vpack.c.b16 %v4972_v12, %v4972_v12 }
  0xae   :  { %2331 = vmatprep.subr.bf16.mxu0 %v4289_v5  ;;  %2495 = vmatprep.subr.bf16.mxu1 %v4292_v6  ;;  %v4379_v5 = vld [vmem:[%s5836_s3 + $0x624] ss:$16 sps:$4 sm:$0xff]   ;;  %v4382_v6 = vld [vmem:[%s5836_s3 + $0x62c] ss:$16 sps:$4 sm:$0xff]   ;;  %v4380_v12 = vld [vmem:[%s5836_s3 + $0x628] ss:$16 sps:$4 sm:$0xff]  }
  0xb1   :  { %2332 = vmatpush1.bf16.msra.mxu0 %v4287_v7  ;;  %2496 = vmatpush1.bf16.msra.mxu1 %v4290_v8  ;;  %v4377_v7 = vld [vmem:[%s5836_s3 + $0x620] ss:$16 sps:$4 sm:$0xff]   ;;  %v707_v8 = vpack.c.b16 %v5222_v60, %v5222_v60 }
  0xb2   :  { %2333 = vmatprep.subr.bf16.mxu0 %v4295_v9  ;;  %2497 = vmatprep.subr.bf16.mxu1 %v4298_v10  ;;  %v4385_v9 = vld [vmem:[%s5836_s3 + $0x644] ss:$16 sps:$4 sm:$0xff]   ;;  %v4388_v10 = vld [vmem:[%s5836_s3 + $0x64c] ss:$16 sps:$4 sm:$0xff]   ;;  %v4383_v60 = vld [vmem:[%s5836_s3 + $0x640] ss:$16 sps:$4 sm:$0xff]  }
  0xb5   :  { %2334 = vmatpush1.bf16.msra.mxu0 %v4293_v11  ;;  %2498 = vmatpush1.bf16.msra.mxu1 %v4296_v13  ;;  %v4386_v11 = vld [vmem:[%s5836_s3 + $0x648] ss:$16 sps:$4 sm:$0xff]   ;;  %v4391_v13 = vld [vmem:[%s5836_s3 + $0x664] ss:$16 sps:$4 sm:$0xff]  }
  0xb6   :  { %2335 = vmatprep.subr.bf16.mxu0 %v4301_v14  ;;  %2499 = vmatprep.subr.bf16.mxu1 %v4304_v15  ;;  %v4394_v14 = vld [vmem:[%s5836_s3 + $0x66c] ss:$16 sps:$4 sm:$0xff]   ;;  %v4389_v15 = vld [vmem:[%s5836_s3 + $0x660] ss:$16 sps:$4 sm:$0xff]  }
  0xb9   :  { %2336 = vmatpush1.bf16.msra.mxu0 %v4299_v16  ;;  %2500 = vmatpush1.bf16.msra.mxu1 %v4302_v17  ;;  %v4392_v16 = vld [vmem:[%s5836_s3 + $0x668] ss:$16 sps:$4 sm:$0xff]   ;;  %v4397_v17 = vld [vmem:[%s5836_s3 + $0x684] ss:$16 sps:$4 sm:$0xff]  }
  0xba   :  { %2337 = vmatprep.subr.bf16.mxu0 %v4307_v18  ;;  %2501 = vmatprep.subr.bf16.mxu1 %v4310_v19  ;;  %v4400_v18 = vld [vmem:[%s5836_s3 + $0x68c] ss:$16 sps:$4 sm:$0xff]   ;;  %v4395_v19 = vld [vmem:[%s5836_s3 + $0x680] ss:$16 sps:$4 sm:$0xff]  }
  0xbd   :  { %2338 = vmatpush1.bf16.msra.mxu0 %v4305_v20  ;;  %2502 = vmatpush1.bf16.msra.mxu1 %v4308_v21  ;;  %v4398_v20 = vld [vmem:[%s5836_s3 + $0x688] ss:$16 sps:$4 sm:$0xff]   ;;  %v4403_v21 = vld [vmem:[%s5836_s3 + $0x6a4] ss:$16 sps:$4 sm:$0xff]  }
  0xbe   :  { %2339 = vmatprep.subr.bf16.mxu0 %v4313_v22  ;;  %2503 = vmatprep.subr.bf16.mxu1 %v4316_v23  ;;  %v4406_v22 = vld [vmem:[%s5836_s3 + $0x6ac] ss:$16 sps:$4 sm:$0xff]   ;;  %v4401_v23 = vld [vmem:[%s5836_s3 + $0x6a0] ss:$16 sps:$4 sm:$0xff]  }
  0xc1   :  { %2340 = vmatpush1.bf16.msra.mxu0 %v4311_v24  ;;  %2504 = vmatpush1.bf16.msra.mxu1 %v4314_v25  ;;  %v4404_v24 = vld [vmem:[%s5836_s3 + $0x6a8] ss:$16 sps:$4 sm:$0xff]   ;;  %v4409_v25 = vld [vmem:[%s5836_s3 + $0x6c4] ss:$16 sps:$4 sm:$0xff]  }
  0xc2   :  { %2341 = vmatprep.subr.bf16.mxu0 %v4319_v26  ;;  %2505 = vmatprep.subr.bf16.mxu1 %v4322_v27  ;;  %v4412_v26 = vld [vmem:[%s5836_s3 + $0x6cc] ss:$16 sps:$4 sm:$0xff]   ;;  %v4407_v27 = vld [vmem:[%s5836_s3 + $0x6c0] ss:$16 sps:$4 sm:$0xff]  }
  0xc5   :  { %2342 = vmatpush1.bf16.msra.mxu0 %v4317_v28  ;;  %2506 = vmatpush1.bf16.msra.mxu1 %v4320_v29  ;;  %v4410_v28 = vld [vmem:[%s5836_s3 + $0x6c8] ss:$16 sps:$4 sm:$0xff]   ;;  %v4415_v29 = vld [vmem:[%s5836_s3 + $0x6e4] ss:$16 sps:$4 sm:$0xff]  }
  0xc6   :  { %2343 = vmatprep.subr.bf16.mxu0 %v4325_v30  ;;  %2507 = vmatprep.subr.bf16.mxu1 %v4328_v31  ;;  %v4418_v30 = vld [vmem:[%s5836_s3 + $0x6ec] ss:$16 sps:$4 sm:$0xff]   ;;  %v4413_v31 = vld [vmem:[%s5836_s3 + $0x6e0] ss:$16 sps:$4 sm:$0xff]  }
  0xc9   :  { %2344 = vmatpush1.bf16.msra.mxu0 %v4323_v32  ;;  %2508 = vmatpush1.bf16.msra.mxu1 %v4326_v33  ;;  %v4416_v32 = vld [vmem:[%s5836_s3 + $0x6e8] ss:$16 sps:$4 sm:$0xff]   ;;  %v4421_v33 = vld [vmem:[%s5836_s3 + $0x704] ss:$16 sps:$4 sm:$0xff]  }
  0xca   :  { %2345 = vmatprep.subr.bf16.mxu0 %v4331_v34  ;;  %2509 = vmatprep.subr.bf16.mxu1 %v4334_v35  ;;  %v4424_v34 = vld [vmem:[%s5836_s3 + $0x70c] ss:$16 sps:$4 sm:$0xff]   ;;  %v4419_v35 = vld [vmem:[%s5836_s3 + $0x700] ss:$16 sps:$4 sm:$0xff]  }
  0xcd   :  { %2346 = vmatpush1.bf16.msra.mxu0 %v4329_v36  ;;  %2510 = vmatpush1.bf16.msra.mxu1 %v4332_v37  ;;  %v4422_v36 = vld [vmem:[%s5836_s3 + $0x708] ss:$16 sps:$4 sm:$0xff]   ;;  %v4427_v37 = vld [vmem:[%s5836_s3 + $0x724] ss:$16 sps:$4 sm:$0xff]  }
  0xce   :  { %2347 = vmatprep.subr.bf16.mxu0 %v4337_v38  ;;  %2511 = vmatprep.subr.bf16.mxu1 %v4340_v39  ;;  %v4430_v38 = vld [vmem:[%s5836_s3 + $0x72c] ss:$16 sps:$4 sm:$0xff]   ;;  %v4425_v39 = vld [vmem:[%s5836_s3 + $0x720] ss:$16 sps:$4 sm:$0xff]  }
  0xd1   :  { %2348 = vmatpush1.bf16.msra.mxu0 %v4335_v40  ;;  %2512 = vmatpush1.bf16.msra.mxu1 %v4338_v41  ;;  %v4428_v40 = vld [vmem:[%s5836_s3 + $0x728] ss:$16 sps:$4 sm:$0xff]   ;;  %v4433_v41 = vld [vmem:[%s5836_s3 + $0x744] ss:$16 sps:$4 sm:$0xff]  }
  0xd2   :  { %2349 = vmatprep.subr.bf16.mxu0 %v4343_v42  ;;  %2513 = vmatprep.subr.bf16.mxu1 %v4346_v43  ;;  %v4436_v42 = vld [vmem:[%s5836_s3 + $0x74c] ss:$16 sps:$4 sm:$0xff]   ;;  %v4431_v43 = vld [vmem:[%s5836_s3 + $0x740] ss:$16 sps:$4 sm:$0xff]  }
  0xd5   :  { %2350 = vmatpush1.bf16.msra.mxu0 %v4341_v44  ;;  %2514 = vmatpush1.bf16.msra.mxu1 %v4344_v45  ;;  %v4434_v44 = vld [vmem:[%s5836_s3 + $0x748] ss:$16 sps:$4 sm:$0xff]   ;;  %v4439_v45 = vld [vmem:[%s5836_s3 + $0x764] ss:$16 sps:$4 sm:$0xff]  }
  0xd6   :  { %2351 = vmatprep.subr.bf16.mxu0 %v4349_v46  ;;  %2515 = vmatprep.subr.bf16.mxu1 %v4352_v47  ;;  %v4442_v46 = vld [vmem:[%s5836_s3 + $0x76c] ss:$16 sps:$4 sm:$0xff]   ;;  %v4437_v47 = vld [vmem:[%s5836_s3 + $0x760] ss:$16 sps:$4 sm:$0xff]  }
  0xd9   :  { %2352 = vmatpush1.bf16.msra.mxu0 %v4347_v48  ;;  %2516 = vmatpush1.bf16.msra.mxu1 %v4350_v49  ;;  %v4440_v48 = vld [vmem:[%s5836_s3 + $0x768] ss:$16 sps:$4 sm:$0xff]   ;;  %v4445_v49 = vld [vmem:[%s5836_s3 + $0x784] ss:$16 sps:$4 sm:$0xff]  }
  0xda   :  { %2353 = vmatprep.subr.bf16.mxu0 %v4355_v50  ;;  %2517 = vmatprep.subr.bf16.mxu1 %v4358_v51  ;;  %v4448_v50 = vld [vmem:[%s5836_s3 + $0x78c] ss:$16 sps:$4 sm:$0xff]   ;;  %v4443_v51 = vld [vmem:[%s5836_s3 + $0x780] ss:$16 sps:$4 sm:$0xff]  }
  0xdd   :  { %2354 = vmatpush1.bf16.msra.mxu0 %v4353_v52  ;;  %2518 = vmatpush1.bf16.msra.mxu1 %v4356_v53  ;;  %v4446_v52 = vld [vmem:[%s5836_s3 + $0x788] ss:$16 sps:$4 sm:$0xff]   ;;  %v4451_v53 = vld [vmem:[%s5836_s3 + $0x7a4] ss:$16 sps:$4 sm:$0xff]  }
  0xde   :  { %2355 = vmatprep.subr.bf16.mxu0 %v4361_v54  ;;  %2519 = vmatprep.subr.bf16.mxu1 %v4364_v55  ;;  %v4454_v54 = vld [vmem:[%s5836_s3 + $0x7ac] ss:$16 sps:$4 sm:$0xff]   ;;  %v4449_v55 = vld [vmem:[%s5836_s3 + $0x7a0] ss:$16 sps:$4 sm:$0xff]  }
  0xe1   :  { %2356 = vmatpush1.bf16.msra.mxu0 %v4359_v56  ;;  %2520 = vmatpush1.bf16.msra.mxu1 %v4362_v57  ;;  %v4452_v56 = vld [vmem:[%s5836_s3 + $0x7a8] ss:$16 sps:$4 sm:$0xff]   ;;  %v4457_v57 = vld [vmem:[%s5836_s3 + $0x7c4] ss:$16 sps:$4 sm:$0xff]  }
  0xe2   :  { %2357 = vmatprep.subr.bf16.mxu0 %v4367_v58  ;;  %2521 = vmatprep.subr.bf16.mxu1 %v4370_v59  ;;  %v4460_v58 = vld [vmem:[%s5836_s3 + $0x7cc] ss:$16 sps:$4 sm:$0xff]   ;;  %v4455_v59 = vld [vmem:[%s5836_s3 + $0x7c0] ss:$16 sps:$4 sm:$0xff]  }
  0xe5   :  { %2358 = vmatpush1.bf16.msra.mxu0 %v4365_v61  ;;  %2522 = vmatpush1.bf16.msra.mxu1 %v4368_v62  ;;  %v4458_v61 = vld [vmem:[%s5836_s3 + $0x7c8] ss:$16 sps:$4 sm:$0xff]   ;;  %v4463_v62 = vld [vmem:[%s5836_s3 + $0x7e4] ss:$16 sps:$4 sm:$0xff]  }
  0xe6   :  { %2368 = vmatprep.subr.bf16.mxu0 %v4373_v0  ;;  %2532 = vmatprep.subr.bf16.mxu1 %v4376_v1  ;;  %v4466_v0 = vld [vmem:[%s5836_s3 + $0x7ec] ss:$16 sps:$4 sm:$0xff]   ;;  %v4461_v1 = vld [vmem:[%s5836_s3 + $0x7e0] ss:$16 sps:$4 sm:$0xff]  }
  0xe8   :  { %2360 = vmatmul.mubr.bf16.vlgmr.msra.gmra.mrb[0].mxu0 %v686_v4  ;;  %2524 = vmatmul.mubr.bf16.vlgmr.msra.gmra.mrb[0].mxu1 %v686_v4  ;;  %v4468_v4 = vld [vmem:[%s5837_s4 + $0xc0] sm:$0xff]  }
  0xe9   :  { %2369 = vmatpush1.bf16.msra.mxu0 %v4371_v2  ;;  %2533 = vmatpush1.bf16.msra.mxu1 %v4374_v3  ;;  %v4464_v2 = vld [vmem:[%s5836_s3 + $0x7e8] ss:$16 sps:$4 sm:$0xff]   ;;  %v4467_v3 = vld [vmem:[%s5837_s4 + $0x40] sm:$0xff]  }
  0xea   :  { %2370 = vmatprep.subr.bf16.mxu0 %v4379_v5  ;;  %2534 = vmatprep.subr.bf16.mxu1 %v4382_v6  ;;  %v700_v5 = vpack.c.b16 %v5229_v63, %v5229_v63  ;;  %v4469_v6 = vld [vmem:[%s5837_s4] sm:$0xff]   ;;  %v4472_v63 = vld [vmem:[%s5837_s4 + $0xc8] sm:$0xff]  }
  0xeb   :  { %2400 = vmatprep.mubr.bf16.mxu0 %v707_v8  ;;  %2564 = vmatprep.mubr.bf16.mxu1 %v707_v8  ;;  %v4471_v8 = vld [vmem:[%s5837_s4 + $0x48] sm:$0xff]  }
  0xed   :  { %2371 = vmatpush1.bf16.msra.mxu0 %v4377_v7  ;;  %2535 = vmatpush1.bf16.msra.mxu1 %v4380_v12  ;;  %v4470_v7 = vld [vmem:[%s5837_s4 + $0x80] sm:$0xff]   ;;  %v4473_v12 = vld [vmem:[%s5837_s4 + $0x8] sm:$0xff]  }
  0xee   :  { %2372 = vmatprep.subr.bf16.mxu0 %v4385_v9  ;;  %2536 = vmatprep.subr.bf16.mxu1 %v4388_v10  ;;  %v4474_v9 = vld [vmem:[%s5837_s4 + $0x88] sm:$0xff]   ;;  %v4475_v10 = vld [vmem:[%s5837_s4 + $0x50] sm:$0xff]  }
  0xf1   :  { %2373 = vmatpush1.bf16.msra.mxu0 %v4383_v60  ;;  %2537 = vmatpush1.bf16.msra.mxu1 %v4386_v11  ;;  %v4476_v60 = vld [vmem:[%s5837_s4 + $0xd0] sm:$0xff]  }
  0xf2   :  { %2374 = vmatprep.subr.bf16.mxu0 %v4391_v13  ;;  %2538 = vmatprep.subr.bf16.mxu1 %v4394_v14  ;;  %v4477_v11 = vld [vmem:[%s5837_s4 + $0x10] sm:$0xff]   ;;  %v4479_v14 = vld [vmem:[%s5837_s4 + $0x58] sm:$0xff]  }
  0xf3   :  { %v4478_v13 = vld [vmem:[%s5837_s4 + $0x90] sm:$0xff]  }
  0xf5   :  { %2375 = vmatpush1.bf16.msra.mxu0 %v4389_v15  ;;  %2539 = vmatpush1.bf16.msra.mxu1 %v4392_v16  ;;  %v4480_v15 = vld [vmem:[%s5837_s4 + $0xd8] sm:$0xff]  }
  0xf6   :  { %2376 = vmatprep.subr.bf16.mxu0 %v4397_v17  ;;  %2540 = vmatprep.subr.bf16.mxu1 %v4400_v18  ;;  %v4481_v16 = vld [vmem:[%s5837_s4 + $0x18] sm:$0xff]   ;;  %v4483_v18 = vld [vmem:[%s5837_s4 + $0x60] sm:$0xff]  }
  0xf7   :  { %v4482_v17 = vld [vmem:[%s5837_s4 + $0x98] sm:$0xff]  }
  0xf9   :  { %2377 = vmatpush1.bf16.msra.mxu0 %v4395_v19  ;;  %2541 = vmatpush1.bf16.msra.mxu1 %v4398_v20  ;;  %v4484_v19 = vld [vmem:[%s5837_s4 + $0xe0] sm:$0xff]  }
  0xfa   :  { %2378 = vmatprep.subr.bf16.mxu0 %v4403_v21  ;;  %2542 = vmatprep.subr.bf16.mxu1 %v4406_v22  ;;  %v4485_v20 = vld [vmem:[%s5837_s4 + $0x20] sm:$0xff]   ;;  %v4487_v22 = vld [vmem:[%s5837_s4 + $0x68] sm:$0xff]  }
  0xfb   :  { %v4486_v21 = vld [vmem:[%s5837_s4 + $0xa0] sm:$0xff]  }
  0xfd   :  { %2379 = vmatpush1.bf16.msra.mxu0 %v4401_v23  ;;  %2543 = vmatpush1.bf16.msra.mxu1 %v4404_v24  ;;  %v4488_v23 = vld [vmem:[%s5837_s4 + $0xe8] sm:$0xff]  }
  0xfe   :  { %2380 = vmatprep.subr.bf16.mxu0 %v4409_v25  ;;  %2544 = vmatprep.subr.bf16.mxu1 %v4412_v26  ;;  %v4489_v24 = vld [vmem:[%s5837_s4 + $0x28] sm:$0xff]   ;;  %v4491_v26 = vld [vmem:[%s5837_s4 + $0x70] sm:$0xff]  }
  0xff   :  { %v4490_v25 = vld [vmem:[%s5837_s4 + $0xa8] sm:$0xff]  }
 0x101   :  { %2381 = vmatpush1.bf16.msra.mxu0 %v4407_v27  ;;  %2545 = vmatpush1.bf16.msra.mxu1 %v4410_v28  ;;  %v4492_v27 = vld [vmem:[%s5837_s4 + $0xf0] sm:$0xff]  }
 0x102   :  { %2382 = vmatprep.subr.bf16.mxu0 %v4415_v29  ;;  %2546 = vmatprep.subr.bf16.mxu1 %v4418_v30  ;;  %v4493_v28 = vld [vmem:[%s5837_s4 + $0x30] sm:$0xff]   ;;  %v4495_v30 = vld [vmem:[%s5837_s4 + $0x78] sm:$0xff]  }
 0x103   :  { %v4494_v29 = vld [vmem:[%s5837_s4 + $0xb0] sm:$0xff]  }
 0x105   :  { %2383 = vmatpush1.bf16.msra.mxu0 %v4413_v31  ;;  %2547 = vmatpush1.bf16.msra.mxu1 %v4416_v32  ;;  %v4496_v31 = vld [vmem:[%s5837_s4 + $0xf8] sm:$0xff]  }
 0x106   :  { %2384 = vmatprep.subr.bf16.mxu0 %v4421_v33  ;;  %2548 = vmatprep.subr.bf16.mxu1 %v4424_v34  ;;  %v4497_v32 = vld [vmem:[%s5837_s4 + $0x38] sm:$0xff]   ;;  %v4501_v34 = vld [vmem:[#allocation2 + $0x4] ss:$16 sps:$4 sm:$0xff]  }
 0x107   :  { %v4498_v33 = vld [vmem:[%s5837_s4 + $0xb8] sm:$0xff]  }
 0x109   :  { %2385 = vmatpush1.bf16.msra.mxu0 %v4419_v35  ;;  %2549 = vmatpush1.bf16.msra.mxu1 %v4422_v36  ;;  %v4504_v35 = vld [vmem:[#allocation2 + $0xc] ss:$16 sps:$4 sm:$0xff]  }
 0x10a   :  { %2386 = vmatprep.subr.bf16.mxu0 %v4427_v37  ;;  %2550 = vmatprep.subr.bf16.mxu1 %v4430_v38 }
 0x10d   :  { %2387 = vmatpush1.bf16.msra.mxu0 %v4425_v39  ;;  %2551 = vmatpush1.bf16.msra.mxu1 %v4428_v40 }
 0x10e   :  { %2388 = vmatprep.subr.bf16.mxu0 %v4433_v41  ;;  %2552 = vmatprep.subr.bf16.mxu1 %v4436_v42 }
 0x111   :  { %2389 = vmatpush1.bf16.msra.mxu0 %v4431_v43  ;;  %2553 = vmatpush1.bf16.msra.mxu1 %v4434_v44 }
 0x112   :  { %2390 = vmatprep.subr.bf16.mxu0 %v4439_v45  ;;  %2554 = vmatprep.subr.bf16.mxu1 %v4442_v46 }
 0x115   :  { %2391 = vmatpush1.bf16.msra.mxu0 %v4437_v47  ;;  %2555 = vmatpush1.bf16.msra.mxu1 %v4440_v48 }
 0x116   :  { %2392 = vmatprep.subr.bf16.mxu0 %v4445_v49  ;;  %2556 = vmatprep.subr.bf16.mxu1 %v4448_v50  ;;  %v4499_v50 = vld [vmem:[#allocation2] ss:$16 sps:$4 sm:$0xff]  }
 0x119   :  { %2393 = vmatpush1.bf16.msra.mxu0 %v4443_v51  ;;  %2557 = vmatpush1.bf16.msra.mxu1 %v4446_v52  ;;  %v4502_v51 = vld [vmem:[#allocation2 + $0x8] ss:$16 sps:$4 sm:$0xff]  }
 0x11a   :  { %2394 = vmatprep.subr.bf16.mxu0 %v4451_v53  ;;  %2558 = vmatprep.subr.bf16.mxu1 %v4454_v54  ;;  %v4507_v54 = vld [vmem:[#allocation2 + $0x24] ss:$16 sps:$4 sm:$0xff]  }
 0x11d   :  { %2395 = vmatpush1.bf16.msra.mxu0 %v4449_v55  ;;  %2559 = vmatpush1.bf16.msra.mxu1 %v4452_v56  ;;  %v4510_v55 = vld [vmem:[#allocation2 + $0x2c] ss:$16 sps:$4 sm:$0xff]   ;;  %v4505_v56 = vld [vmem:[#allocation2 + $0x20] ss:$16 sps:$4 sm:$0xff]  }
 0x11e   :  { %2396 = vmatprep.subr.bf16.mxu0 %v4457_v57  ;;  %2560 = vmatprep.subr.bf16.mxu1 %v4460_v58  ;;  %v4508_v57 = vld [vmem:[#allocation2 + $0x28] ss:$16 sps:$4 sm:$0xff]   ;;  %v4513_v58 = vld [vmem:[#allocation2 + $0x44] ss:$16 sps:$4 sm:$0xff]  }
 0x121   :  { %2397 = vmatpush1.bf16.msra.mxu0 %v4455_v59  ;;  %2561 = vmatpush1.bf16.msra.mxu1 %v4458_v61  ;;  %v4516_v59 = vld [vmem:[#allocation2 + $0x4c] ss:$16 sps:$4 sm:$0xff]   ;;  %v4511_v61 = vld [vmem:[#allocation2 + $0x40] ss:$16 sps:$4 sm:$0xff]  }
 0x122   :  { %2398 = vmatprep.subr.bf16.mxu0 %v4463_v62  ;;  %2562 = vmatprep.subr.bf16.mxu1 %v4466_v0  ;;  %v4514_v62 = vld [vmem:[#allocation2 + $0x48] ss:$16 sps:$4 sm:$0xff]   ;;  %v4519_v0 = vld [vmem:[#allocation2 + $0x64] ss:$16 sps:$4 sm:$0xff]  }
 0x125   :  { %2399 = vmatpush1.bf16.msra.mxu0 %v4461_v1  ;;  %2563 = vmatpush1.bf16.msra.mxu1 %v4464_v2  ;;  %v4522_v1 = vld [vmem:[#allocation2 + $0x6c] ss:$16 sps:$4 sm:$0xff]   ;;  %v4517_v2 = vld [vmem:[#allocation2 + $0x60] ss:$16 sps:$4 sm:$0xff]  }
 0x126   :  { %3912 = vmatprep.subr.bf16.mxu0 %v4467_v3  ;;  %3934 = vmatprep.subr.bf16.mxu1 %v4468_v4  ;;  %v4520_v3 = vld [vmem:[#allocation2 + $0x68] ss:$16 sps:$4 sm:$0xff]   ;;  %v4582_v4 = vmov 0  }
 0x128   :  { %2401 = vmatmul.mubr.bf16.vlgmr.msra.gmra.mrb[0].mxu0 %v700_v5  ;;  %2565 = vmatmul.mubr.bf16.vlgmr.msra.gmra.mrb[0].mxu1 %v700_v5  ;;  %v4523_v5 = vld [vmem:[%s5841_s8 + $0x40] sm:$0xff]  }
 0x129   :  { %3913 = vmatpush3.bf16.msra.mxu0 %v4469_v6  ;;  %3935 = vmatpush3.bf16.msra.mxu1 %v4470_v7  ;;  %v4524_v6 = vld [vmem:[%s5841_s8 + $0xc0] sm:$0xff]  }
 0x12a   :  { %3914 = vmatprep.subr.bf16.mxu0 %v4471_v8  ;;  %3936 = vmatprep.subr.bf16.mxu1 %v4472_v63  ;;  %v3828_v63 = vld [vmem:[%s5838_s5] ss:$0 sm:$0xff] }
 0x12d   :  { %3915 = vmatpush3.bf16.msra.mxu0 %v4473_v12  ;;  %3937 = vmatpush3.bf16.msra.mxu1 %v4474_v9 }
 0x12e   :  { %3916 = vmatprep.subr.bf16.mxu0 %v4475_v10  ;;  %3938 = vmatprep.subr.bf16.mxu1 %v4476_v60 }
 0x131   :  { %3917 = vmatpush3.bf16.msra.mxu0 %v4477_v11  ;;  %3939 = vmatpush3.bf16.msra.mxu1 %v4478_v13 }
 0x132   :  { %3918 = vmatprep.subr.bf16.mxu0 %v4479_v14  ;;  %3940 = vmatprep.subr.bf16.mxu1 %v4480_v15 }
 0x135   :  { %3919 = vmatpush3.bf16.msra.mxu0 %v4481_v16  ;;  %3941 = vmatpush3.bf16.msra.mxu1 %v4482_v17 }
 0x136   :  { %3920 = vmatprep.subr.bf16.mxu0 %v4483_v18  ;;  %3942 = vmatprep.subr.bf16.mxu1 %v4484_v19  ;;  %v4525_v19 = vld [vmem:[%s5841_s8] sm:$0xff]  }
 0x139   :  { %3921 = vmatpush3.bf16.msra.mxu0 %v4485_v20  ;;  %3943 = vmatpush3.bf16.msra.mxu1 %v4486_v21  ;;  %v4526_v20 = vld [vmem:[%s5841_s8 + $0x80] sm:$0xff]  }
 0x13a   :  { %3922 = vmatprep.subr.bf16.mxu0 %v4487_v22  ;;  %3944 = vmatprep.subr.bf16.mxu1 %v4488_v23  ;;  %v4527_v22 = vld [vmem:[%s5841_s8 + $0x48] sm:$0xff]  }
 0x13b   :  { %v4528_v23 = vld [vmem:[%s5841_s8 + $0xc8] sm:$0xff]  }
 0x13d   :  { %3923 = vmatpush3.bf16.msra.mxu0 %v4489_v24  ;;  %3945 = vmatpush3.bf16.msra.mxu1 %v4490_v25  ;;  %v4529_v24 = vld [vmem:[%s5841_s8 + $0x8] sm:$0xff]  }
 0x13e   :  { %3924 = vmatprep.subr.bf16.mxu0 %v4491_v26  ;;  %3946 = vmatprep.subr.bf16.mxu1 %v4492_v27  ;;  %v4530_v25 = vld [vmem:[%s5841_s8 + $0x88] sm:$0xff]   ;;  %v4531_v26 = vld [vmem:[%s5841_s8 + $0x50] sm:$0xff]  }
 0x13f   :  { %v4532_v27 = vld [vmem:[%s5841_s8 + $0xd0] sm:$0xff]  }
 0x141   :  { %3925 = vmatpush3.bf16.msra.mxu0 %v4493_v28  ;;  %3947 = vmatpush3.bf16.msra.mxu1 %v4494_v29  ;;  %v4533_v28 = vld [vmem:[%s5841_s8 + $0x10] sm:$0xff]  }
 0x142   :  { %3926 = vmatprep.subr.bf16.mxu0 %v4495_v30  ;;  %3948 = vmatprep.subr.bf16.mxu1 %v4496_v31  ;;  %v4534_v29 = vld [vmem:[%s5841_s8 + $0x90] sm:$0xff]   ;;  %v4535_v30 = vld [vmem:[%s5841_s8 + $0x58] sm:$0xff]  }
 0x143   :  { %v4536_v31 = vld [vmem:[%s5841_s8 + $0xd8] sm:$0xff]  }
 0x145   :  { %3927 = vmatpush3.bf16.msra.mxu0 %v4497_v32  ;;  %3949 = vmatpush3.bf16.msra.mxu1 %v4498_v33  ;;  %v4537_v32 = vld [vmem:[%s5841_s8 + $0x18] sm:$0xff]  }
 0x146   :  { %3048 = vmatprep.subr.bf16.mxu0 %v4501_v34  ;;  %3089 = vmatprep.subr.bf16.mxu1 %v4504_v35  ;;  %v4538_v33 = vld [vmem:[%s5841_s8 + $0x98] sm:$0xff]   ;;  %v4539_v34 = vld [vmem:[%s5841_s8 + $0x60] sm:$0xff]  }
 0x147   :  { %v4540_v35 = vld [vmem:[%s5841_s8 + $0xe0] sm:$0xff]  }
 0x1fb   :  { %v2402_v36 = vpop.f32.mrb[0].mxu0  ;;  %v2566_v37 = vpop.f32.mrb[0].mxu1 }
 0x1fc   :  { %v5702_v38 = vmax.f32 %v2402_v36, 0.0  ;;  %v5704_v39 = vmax.f32 %v2566_v37, 0.0  ;;  %v2404_v40 = vpop.f32.mrb[1].mxu0  ;;  %v2568_v41 = vpop.f32.mrb[1].mxu1  ;;  %v4541_v36 = vld [vmem:[%s5841_s8 + $0x20] sm:$0xff]  }
 0x1fd   :  { %v5706_v42 = vmax.f32 %v2404_v40, 0.0  ;;  %v5708_v43 = vmax.f32 %v2568_v41, 0.0  ;;  %v2406_v44 = vpop.f32.mrb[2].mxu0  ;;  %v2570_v45 = vpop.f32.mrb[2].mxu1  ;;  %v4542_v37 = vld [vmem:[%s5841_s8 + $0xa0] sm:$0xff]   ;;  %v4543_v40 = vld [vmem:[%s5841_s8 + $0x68] sm:$0xff]  }
 0x1fe   :  { %v2407_v46 = vpop.f32.mrb[3].mxu0  ;;  %v2571_v47 = vpop.f32.mrb[3].mxu1  ;;  %v2577_v52 = vpack.c.bf16 %v5702_v38, %v5702_v38  ;;  %v2579_v53 = vpack.c.bf16 %v5704_v39, %v5704_v39  ;;  %v4544_v41 = vld [vmem:[%s5841_s8 + $0xe8] sm:$0xff]  }
 0x1ff   :  { %v2578_v48 = vpack.c.bf16 %v5706_v42, %v5706_v42  ;;  %v2580_v49 = vpack.c.bf16 %v5708_v43, %v5708_v43  ;;  %v4545_v44 = vld [vmem:[%s5841_s8 + $0x28] sm:$0xff]   ;;  %v4547_v46 = vld [vmem:[%s5841_s8 + $0x70] sm:$0xff]  }
 0x200   :  { %v4546_v45 = vld [vmem:[%s5841_s8 + $0xa8] sm:$0xff]   ;;  %v4548_v47 = vld [vmem:[%s5841_s8 + $0xf0] sm:$0xff]  }
 0x201   :  { %2876 = vmatprep.mubr.bf16.mxu0 %v2578_v48  ;;  %2916 = vmatprep.mubr.bf16.mxu1 %v2580_v49  ;;  %v4549_v48 = vld [vmem:[%s5841_s8 + $0x30] sm:$0xff]  }
 0x202   :  { %2877 = vmatmul.mubr.bf16.vlgmr.msra.gmra.mrb[4].mxu0 %v2577_v52  ;;  %2917 = vmatmul.mubr.bf16.vlgmr.msra.gmra.mrb[4].mxu1 %v2579_v53  ;;  %v4550_v49 = vld [vmem:[%s5841_s8 + $0xb0] sm:$0xff]   ;;  %v4553_v52 = vld [vmem:[%s5841_s8 + $0x38] sm:$0xff]  }
 0x203   :  { %3049 = vmatpush1.bf16.msra.mxu0 %v4499_v50  ;;  %3090 = vmatpush1.bf16.msra.mxu1 %v4502_v51  ;;  %v4551_v50 = vld [vmem:[%s5841_s8 + $0x78] sm:$0xff]  }
 0x204   :  { %3050 = vmatprep.subr.bf16.mxu0 %v4507_v54  ;;  %3091 = vmatprep.subr.bf16.mxu1 %v4510_v55  ;;  %v4552_v51 = vld [vmem:[%s5841_s8 + $0xf8] sm:$0xff]   ;;  %v2944_v54 = vlaneseq }
 0x205   :  { %3080 = vmatprep.mubr.bf16.mxu0 %v4582_v4  ;;  %3121 = vmatprep.mubr.bf16.mxu1 %v4582_v4  ;;  %v4554_v53 = vld [vmem:[%s5841_s8 + $0xb8] sm:$0xff]  }
 0x206   :  { %v2945_v55 = vshrl.u32 %v2944_v54, 7 }
 0x207   :  { %3051 = vmatpush1.bf16.msra.mxu0 %v4505_v56  ;;  %3092 = vmatpush1.bf16.msra.mxu1 %v4508_v57 }
 0x208   :  { %3052 = vmatprep.subr.bf16.mxu0 %v4513_v58  ;;  %3093 = vmatprep.subr.bf16.mxu1 %v4516_v59  ;;  %v2946_v56 = vsub.s32 0, %v2945_v55  ;;  %v2954_v57 = vsub.s32 2, %v2945_v55  ;;  %v2942_v58 = vld [vmem:[%s5840_s7] sm:$0xf]  ;;  %v2950_v59 = vsub.s32 1, %v2945_v55 }
 0x20b   :  { %3053 = vmatpush1.bf16.msra.mxu0 %v4511_v61  ;;  %3094 = vmatpush1.bf16.msra.mxu1 %v4514_v62  ;;  %v2958_v61 = vsub.s32 3, %v2945_v55  ;;  %v2947_v62 = vrot.slane %v2942_v58, %v2946_v56 }
 0x20c   :  { %3054 = vmatprep.subr.bf16.mxu0 %v4519_v0  ;;  %3095 = vmatprep.subr.bf16.mxu1 %v4522_v1  ;;  %v2955_v0 = vrot.slane %v2942_v58, %v2954_v57  ;;  %v2951_v1 = vrot.slane %v2942_v58, %v2950_v59 }
 0x20d   :  { %v2959_v4 = vrot.slane %v2942_v58, %v2958_v61 }
 0x20f   :  { %3055 = vmatpush1.bf16.msra.mxu0 %v4517_v2  ;;  %3096 = vmatpush1.bf16.msra.mxu1 %v4520_v3  ;;  %v4583_v2 = vmov 1983009808  }
 0x210   :  { %3956 = vmatprep.subr.bf16.mxu0 %v4523_v5  ;;  %3978 = vmatprep.subr.bf16.mxu1 %v4524_v6  ;;  %v3145_v3 = vunpack.c.l.s4 %v4583_v2 }
 0x2d5   :  { %v3928_v7 = vpop.f32.mrb[4].mxu0  ;;  %v3950_v8 = vpop.f32.mrb[4].mxu1 }
 0x2d6   :  { %v3929_v12 = vpop.f32.mrb[5].mxu0  ;;  %v3951_v9 = vpop.f32.mrb[5].mxu1 }
 0x2d7   :  { %v3930_v10 = vadd.f32 %v3929_v12, %v3928_v7  ;;  %v3952_v60 = vadd.f32 %v3951_v9, %v3950_v8  ;;  %v3931_v11 = vpop.f32.mrb[6].mxu0  ;;  %v3953_v13 = vpop.f32.mrb[6].mxu1 }
 0x2d8   :  { %v3932_v14 = vpop.f32.mrb[7].mxu0  ;;  %v3954_v15 = vpop.f32.mrb[7].mxu1 }
 0x2d9   :  { %v2879_v16 = vadd.f32 %v3930_v10, %v3828_v63  ;;  %v3146_v10 = vunpack.c.0.s8 %v3145_v3 }
 0x2db   :  { %v2919_v17 = vadd.f32 %v3952_v60, %v2879_v16 }
 0x2dd   :  { %v2924_v18 = vmax.f32 %v2919_v17, 0.0 }
 0x2df   :  { %v2925_v21 = vpack.c.bf16 %v2924_v18, %v2924_v18 }
 0x2e1   :  { %3877 = vmatmul.mubr.msk.bf16.vlgmr.msra.gmra.mrb[8].mxu0 %vm3044_vm1, %v2925_v21  ;;  %3878 = vmatmul.mubr.msk.bf16.vlgmr.msra.gmra.mrb[8].mxu1 %vm3044_vm1, %v2925_v21 }
 0x2e2   :  { %3957 = vmatpush3.bf16.msra.mxu0 %v4525_v19  ;;  %3979 = vmatpush3.bf16.msra.mxu1 %v4526_v20 }
 0x2e3   :  { %3958 = vmatprep.subr.bf16.mxu0 %v4527_v22  ;;  %3980 = vmatprep.subr.bf16.mxu1 %v4528_v23  ;;  %v3149_v23 = vsub.s32 %v3146_v10, %v2945_v55 }
 0x2e6   :  { %3959 = vmatpush3.bf16.msra.mxu0 %v4529_v24  ;;  %3981 = vmatpush3.bf16.msra.mxu1 %v4530_v25 }
 0x2e7   :  { %3960 = vmatprep.subr.bf16.mxu0 %v4531_v26  ;;  %3982 = vmatprep.subr.bf16.mxu1 %v4532_v27 }
 0x2ea   :  { %3961 = vmatpush3.bf16.msra.mxu0 %v4533_v28  ;;  %3983 = vmatpush3.bf16.msra.mxu1 %v4534_v29 }
 0x2eb   :  { %3962 = vmatprep.subr.bf16.mxu0 %v4535_v30  ;;  %3984 = vmatprep.subr.bf16.mxu1 %v4536_v31 }
 0x2ee   :  { %3963 = vmatpush3.bf16.msra.mxu0 %v4537_v32  ;;  %3985 = vmatpush3.bf16.msra.mxu1 %v4538_v33 }
 0x2ef   :  { %3964 = vmatprep.subr.bf16.mxu0 %v4539_v34  ;;  %3986 = vmatprep.subr.bf16.mxu1 %v4540_v35 }
 0x2f2   :  { %3965 = vmatpush3.bf16.msra.mxu0 %v4541_v36  ;;  %3987 = vmatpush3.bf16.msra.mxu1 %v4542_v37 }
 0x2f3   :  { %3966 = vmatprep.subr.bf16.mxu0 %v4543_v40  ;;  %3988 = vmatprep.subr.bf16.mxu1 %v4544_v41 }
 0x2f6   :  { %3967 = vmatpush3.bf16.msra.mxu0 %v4545_v44  ;;  %3989 = vmatpush3.bf16.msra.mxu1 %v4546_v45 }
 0x2f7   :  { %3968 = vmatprep.subr.bf16.mxu0 %v4547_v46  ;;  %3990 = vmatprep.subr.bf16.mxu1 %v4548_v47 }
 0x2fa   :  { %3969 = vmatpush3.bf16.msra.mxu0 %v4549_v48  ;;  %3991 = vmatpush3.bf16.msra.mxu1 %v4550_v49 }
 0x2fb   :  { %3970 = vmatprep.subr.bf16.mxu0 %v4551_v50  ;;  %3992 = vmatprep.subr.bf16.mxu1 %v4552_v51 }
 0x2fe   :  { %3971 = vmatpush3.bf16.msra.mxu0 %v4553_v52  ;;  %3993 = vmatpush3.bf16.msra.mxu1 %v4554_v53 }
 0x3b4   :  { %v3082_v5 = vpop.f32.mrb[8].mxu0  ;;  %v3123_v6 = vpop.f32.mrb[8].mxu1 }
 0x3b5   :  { %v3083_v7 = vadd.f32 %v3082_v5, %v2947_v62  ;;  %v3124_v8 = vadd.f32 %v3123_v6, %v2955_v0  ;;  %v3084_v63 = vpop.f32.mrb[9].mxu0  ;;  %v3125_v12 = vpop.f32.mrb[9].mxu1 }
 0x3b6   :  { %v3085_v9 = vadd.f32 %v3084_v63, %v2951_v1  ;;  %v3126_v60 = vadd.f32 %v3125_v12, %v2959_v4  ;;  %v3086_v11 = vpop.f32.mrb[10].mxu0  ;;  %v3127_v13 = vpop.f32.mrb[10].mxu1 }
 0x3b7   :  { %v3130_v14 = vmax.f32 %v3083_v7, 0.0  ;;  %v3132_v15 = vmax.f32 %v3124_v8, 0.0  ;;  %v3087_v16 = vpop.f32.mrb[11].mxu0  ;;  %v3128_v17 = vpop.f32.mrb[11].mxu1 }
 0x3b8   :  { %v3131_v18 = vmax.f32 %v3085_v9, 0.0  ;;  %v3133_v19 = vmax.f32 %v3126_v60, 0.0 }
 0x3b9   :  { %v3134_v20 = vmul.f32 %v3130_v14, %v5702_v38  ;;  %v3136_v21 = vmul.f32 %v3132_v15, %v5704_v39 }
 0x3ba   :  { %v3135_v22 = vmul.f32 %v3131_v18, %v5706_v42  ;;  %v3137_v24 = vmul.f32 %v3133_v19, %v5708_v43  ;;  %v3879_v43 = vld [vmem:[%s5842_s9] ss:$0 sm:$0xff] }
 0x3bb   :  { %v3161_v29 = vpack.c.bf16 %v3134_v20, %v3134_v20  ;;  %v3163_v30 = vpack.c.bf16 %v3136_v21, %v3136_v21 }
 0x3bc   :  { %v3142_v25 = vcombine.low %v3134_v20, %v3135_v22  ;;  %v3143_v26 = vcombine.low %v3136_v21, %v3137_v24  ;;  %v3162_v27 = vpack.c.bf16 %v3135_v22, %v3135_v22  ;;  %v3164_v28 = vpack.c.bf16 %v3137_v24, %v3137_v24 }
 0x3be   :  { %v3150_v31 = vrot.slane %v3142_v25, %v3149_v23  ;;  %v3157_v32 = vrot.slane %v3143_v26, %v3149_v23  ;;  %3460 = vmatprep.mubr.bf16.mxu0 %v3162_v27  ;;  %3500 = vmatprep.mubr.bf16.mxu1 %v3164_v28 }
 0x3bf   :  { %3461 = vmatmul.mubr.bf16.vlgmr.msra.gmra.mrb[12].mxu0 %v3161_v29  ;;  %3501 = vmatmul.mubr.bf16.vlgmr.msra.gmra.mrb[12].mxu1 %v3163_v30 }
 0x3c0   :  { %v3158_v38 = vcombine.low %v3150_v31, %v3157_v32 }
 0x3c2   :  { %3160 = vst [vmem:[%s5843_s10] sm:$0xff] %v3158_v38 }
 0x492   :  { %v3972_v39 = vpop.f32.mrb[12].mxu0  ;;  %v3994_v42 = vpop.f32.mrb[12].mxu1 }
 0x493   :  { %v3973_v33 = vpop.f32.mrb[13].mxu0  ;;  %v3995_v34 = vpop.f32.mrb[13].mxu1 }
 0x494   :  { %v3974_v35 = vadd.f32 %v3973_v33, %v3972_v39  ;;  %v3996_v36 = vadd.f32 %v3995_v34, %v3994_v42  ;;  %v3975_v37 = vpop.f32.mrb[14].mxu0  ;;  %v3997_v40 = vpop.f32.mrb[14].mxu1 }
 0x495   :  { %v3976_v41 = vpop.f32.mrb[15].mxu0  ;;  %v3998_v44 = vpop.f32.mrb[15].mxu1 }
 0x496   :  { %v3463_v45 = vadd.f32 %v3974_v35, %v3879_v43 }
 0x498   :  { %v3503_v46 = vadd.f32 %v3996_v36, %v3463_v45 }
 0x49a   :  { %3508 = vst [vmem:[%s5844_s11] sm:$0x3] %v3503_v46 }
 0x49b   :  { %3517 = vsyncpa [#allocation3], 1 }

</bundles_post_ra>
